<compile_context>
chip_gen: v7x
topology: tpu7x:2x2x1
jax: 0.10.0
libtpu: 0.0.40
codegen_flags: <defaults>
</compile_context>

<pallas_src>
import functools

import jax
import jax.numpy as jnp
import numpy as np
from jax.experimental import pallas as pl
from jax.experimental.pallas import tpu as pltpu

EPS = 1e-5


def _bn_rows(y, gamma, beta, relu):
    # Training-mode BatchNorm in the transposed layout: y is (C, P); per-channel
    # (per-row) statistics over the P = N*H*W lane axis, biased variance.
    # Single pass: sum and sum-of-squares.
    inv_p = 1.0 / y.shape[1]
    s = jnp.sum(y, axis=1, keepdims=True)
    ss = jnp.sum(y * y, axis=1, keepdims=True)
    mean = s * inv_p
    var = ss * inv_p - mean * mean
    scale = jax.lax.rsqrt(var + EPS) * gamma          # (C, 1)
    yh = (y - mean) * scale + beta
    return jnp.maximum(yh, 0.0) if relu else yh


def res_block_kernel(x_ref, hidx_ref, widx_ref,
                     w1_ref, g1_ref, be1_ref,
                     w3_ref, g2_ref, be2_ref,
                     w2_ref, g3_ref, be3_ref,
                     out_ref, *, H, W):
    Cin, P = x_ref.shape

    xt = x_ref[...]                                   # (Cin, P), lane-dense

    # --- CNNBlock 1: 1x1 conv (matmul) -> BN -> ReLU ------------------------
    # Conv bias omitted: cancelled exactly by the BN mean subtraction.
    y1 = jnp.dot(w1_ref[...], xt, preferred_element_type=jnp.float32)
    y1 = _bn_rows(y1, g1_ref[...], be1_ref[...], relu=True)   # (Cr, P)

    # --- CNNBlock 2: 3x3 conv (padding=1) as a single im2col matmul ---------
    # Lane index p = n*H*W + h*W + w.  The 9 shifted views are lane rolls of
    # y1 with out-of-bounds / wrapped lanes masked to zero; they are stacked
    # along sublanes into a (9*Cr, P) patch matrix and hit the MXU once.
    h_idx = hidx_ref[...]                             # (1, P) int32
    w_idx = widx_ref[...]                             # (1, P) int32

    blocks = []
    for dy in (-1, 0, 1):
        for dx in (-1, 0, 1):
            d = dy * W + dx
            shifted = y1 if d == 0 else pltpu.roll(y1, shift=(-d) % P, axis=1)
            valid = ((h_idx + dy >= 0) & (h_idx + dy < H) &
                     (w_idx + dx >= 0) & (w_idx + dx < W))
            blocks.append(jnp.where(valid, shifted, 0.0))
    patches = jnp.concatenate(blocks, axis=0)         # (9*Cr, P)

    y2 = jnp.dot(w3_ref[...], patches, preferred_element_type=jnp.float32)
    y2 = _bn_rows(y2, g2_ref[...], be2_ref[...], relu=True)   # (Cr, P)

    # --- CNNBlock 3: 1x1 conv -> BN (no ReLU) -------------------------------
    y3 = jnp.dot(w2_ref[...], y2, preferred_element_type=jnp.float32)
    y3 = _bn_rows(y3, g3_ref[...], be3_ref[...], relu=False)  # (Cout, P)

    # --- residual (iden = Identity since Cin == Cout != 64) + final ReLU ----
    out_ref[...] = jnp.maximum(y3 + xt, 0.0)          # lane-dense store


def res_block_forward(x, p):
    """x is NCHW (PyTorch layout); params use PyTorch OIHW conv weights."""
    N, Cin, H, W = x.shape
    Cr = p['w1'].shape[0]
    Cout = p['w2'].shape[0]
    assert Cin == Cout, "this instantiation uses the iden = nn.Identity branch"
    P = N * H * W

    # Wrapper-side layout plumbing (XLA): channels on sublanes, pixels on lanes.
    x_t = x.transpose(1, 0, 2, 3).reshape(Cin, P)
    w1m = p['w1'].reshape(Cr, Cin)                                 # (cout, cin)
    w3m = p['w3'].transpose(0, 2, 3, 1).reshape(Cr, 9 * Cr)        # (cout, ky*kx*cin)
    w2m = p['w2'].reshape(Cout, Cr)
    col = lambda v: v.reshape(-1, 1)

    # Precomputed per-lane (h, w) coordinates (avoids in-kernel integer div).
    pix = jnp.arange(P, dtype=jnp.int32)
    h_idx = ((pix // W) % H).reshape(1, P)
    w_idx = (pix % W).reshape(1, P)

    vmem = pl.BlockSpec(memory_space=pltpu.MemorySpace.VMEM)
    args = (x_t, h_idx, w_idx,
            w1m, col(p['g1']), col(p['be1']),
            w3m, col(p['g2']), col(p['be2']),
            w2m, col(p['g3']), col(p['be3']))

    out_t = pl.pallas_call(
        functools.partial(res_block_kernel, H=H, W=W),
        out_shape=jax.ShapeDtypeStruct((Cout, P), jnp.float32),
        in_specs=[vmem] * len(args),
        out_specs=vmem,
    )(*args)

    return out_t.reshape(Cout, N, H, W).transpose(1, 0, 2, 3)      # back to NCHW


def ref_forward(x, p):
    # Plain-JAX NCHW reference (HIGHEST precision, with conv biases) matching
    # the PyTorch module in training mode.
    def bn(y, g, b, relu):
        mean = y.mean(axis=(0, 2, 3), keepdims=True)
        var = ((y - mean) ** 2).mean(axis=(0, 2, 3), keepdims=True)
        yh = ((y - mean) / jnp.sqrt(var + EPS)) * g.reshape(1, -1, 1, 1) \
             + b.reshape(1, -1, 1, 1)
        return jnp.maximum(yh, 0.0) if relu else yh

    dn = ('NCHW', 'OIHW', 'NCHW')
    hp = jax.lax.Precision.HIGHEST
    y = jax.lax.conv_general_dilated(x, p['w1'], (1, 1), 'VALID',
                                     dimension_numbers=dn, precision=hp)
    y = bn(y + p['b1'].reshape(1, -1, 1, 1), p['g1'], p['be1'], True)
    y = jax.lax.conv_general_dilated(y, p['w3'], (1, 1), [(1, 1), (1, 1)],
                                     dimension_numbers=dn, precision=hp)
    y = bn(y + p['b3'].reshape(1, -1, 1, 1), p['g2'], p['be2'], True)
    y = jax.lax.conv_general_dilated(y, p['w2'], (1, 1), 'VALID',
                                     dimension_numbers=dn, precision=hp)
    y = bn(y + p['b2'].reshape(1, -1, 1, 1), p['g3'], p['be3'], False)
    return jnp.maximum(y + x, 0.0)


if __name__ == "__main__":
    N, H, W = 2, 16, 16
    Cin = Cout = 32       # in_channels == out_channels (!= 64) -> iden = Identity
    Cr = 16               # red_channels

    key = jax.random.PRNGKey(0)
    ks = jax.random.split(key, 13)
    p = {
        'w1':  0.1 * jax.random.normal(ks[0], (Cr, Cin, 1, 1), jnp.float32),
        'b1':  0.1 * jax.random.normal(ks[1], (Cr,), jnp.float32),
        'g1':  1.0 + 0.1 * jax.random.normal(ks[2], (Cr,), jnp.float32),
        'be1': 0.1 * jax.random.normal(ks[3], (Cr,), jnp.float32),
        'w3':  0.1 * jax.random.normal(ks[4], (Cr, Cr, 3, 3), jnp.float32),   # OIHW
        'b3':  0.1 * jax.random.normal(ks[5], (Cr,), jnp.float32),
        'g2':  1.0 + 0.1 * jax.random.normal(ks[6], (Cr,), jnp.float32),
        'be2': 0.1 * jax.random.normal(ks[7], (Cr,), jnp.float32),
        'w2':  0.1 * jax.random.normal(ks[8], (Cout, Cr, 1, 1), jnp.float32),
        'b2':  0.1 * jax.random.normal(ks[9], (Cout,), jnp.float32),
        'g3':  1.0 + 0.1 * jax.random.normal(ks[10], (Cout,), jnp.float32),
        'be3': 0.1 * jax.random.normal(ks[11], (Cout,), jnp.float32),
    }
    x = jax.random.normal(ks[12], (N, Cin, H, W), jnp.float32)

    out = jax.block_until_ready(res_block_forward(x, p))
    ref = jax.block_until_ready(ref_forward(x, p))
    np.testing.assert_allclose(np.asarray(out), np.asarray(ref),
                               rtol=1e-2, atol=1e-2)
    print("KERNEL_OK")
</pallas_src>

<mosaic_0001>
module attributes {stable_mosaic.version = 11 : i64} {
  func.func @res_block_kernel(%arg0: memref<32x512xf32, #tpu.memory_space<vmem>>, %arg1: memref<1x512xi32, #tpu.memory_space<vmem>>, %arg2: memref<1x512xi32, #tpu.memory_space<vmem>>, %arg3: memref<16x32xf32, #tpu.memory_space<vmem>>, %arg4: memref<16x1xf32, #tpu.memory_space<vmem>>, %arg5: memref<16x1xf32, #tpu.memory_space<vmem>>, %arg6: memref<16x144xf32, #tpu.memory_space<vmem>>, %arg7: memref<16x1xf32, #tpu.memory_space<vmem>>, %arg8: memref<16x1xf32, #tpu.memory_space<vmem>>, %arg9: memref<32x16xf32, #tpu.memory_space<vmem>>, %arg10: memref<32x1xf32, #tpu.memory_space<vmem>>, %arg11: memref<32x1xf32, #tpu.memory_space<vmem>>, %arg12: memref<32x512xf32, #tpu.memory_space<vmem>>) attributes {dimension_semantics = [], scalar_prefetch = 0 : i64, scratch_operands = 0 : i64, tpu.core_type = #tpu.core_type<tc>} {
    %c0 = arith.constant 0 : index
    %c0_0 = arith.constant 0 : index
    %0 = vector.load %arg0[%c0, %c0_0] : memref<32x512xf32, #tpu.memory_space<vmem>>, vector<32x512xf32>
    %c0_1 = arith.constant 0 : index
    %c0_2 = arith.constant 0 : index
    %1 = vector.load %arg3[%c0_1, %c0_2] : memref<16x32xf32, #tpu.memory_space<vmem>>, vector<16x32xf32>
    %cst = arith.constant dense<0.000000e+00> : vector<16x512xf32>
    %2 = tpu.matmul %1, %0, %cst {dimension_numbers = #tpu.dot_dimension_numbers<[1], [0], [0], [1], [0, 0, 1, 1], [], []>} : vector<16x32xf32>, vector<32x512xf32>, vector<16x512xf32> -> vector<16x512xf32>
    %c0_3 = arith.constant 0 : index
    %c0_4 = arith.constant 0 : index
    %3 = vector.load %arg4[%c0_3, %c0_4] : memref<16x1xf32, #tpu.memory_space<vmem>>, vector<16x1xf32>
    %c0_5 = arith.constant 0 : index
    %c0_6 = arith.constant 0 : index
    %4 = vector.load %arg5[%c0_5, %c0_6] : memref<16x1xf32, #tpu.memory_space<vmem>>, vector<16x1xf32>
    %cst_7 = arith.constant dense<0.000000e+00> : vector<16xf32>
    %5 = vector.multi_reduction <add>, %2, %cst_7 [1] : vector<16x512xf32> to vector<16xf32>
    %6 = vector.shape_cast %5 : vector<16xf32> to vector<16x1xf32>
    %7 = arith.mulf %2, %2 : vector<16x512xf32>
    %cst_8 = arith.constant dense<0.000000e+00> : vector<16xf32>
    %8 = vector.multi_reduction <add>, %7, %cst_8 [1] : vector<16x512xf32> to vector<16xf32>
    %9 = vector.shape_cast %8 : vector<16xf32> to vector<16x1xf32>
    %cst_9 = arith.constant 0.001953125 : f32
    %10 = vector.broadcast %cst_9 : f32 to vector<16x1xf32>
    %11 = arith.mulf %6, %10 : vector<16x1xf32>
    %cst_10 = arith.constant 0.001953125 : f32
    %12 = vector.broadcast %cst_10 : f32 to vector<16x1xf32>
    %13 = arith.mulf %9, %12 : vector<16x1xf32>
    %14 = arith.mulf %11, %11 : vector<16x1xf32>
    %15 = arith.subf %13, %14 : vector<16x1xf32>
    %cst_11 = arith.constant 9.99999974E-6 : f32
    %16 = vector.broadcast %cst_11 : f32 to vector<16x1xf32>
    %17 = arith.addf %15, %16 : vector<16x1xf32>
    %18 = math.rsqrt %17 : vector<16x1xf32>
    %19 = arith.mulf %18, %3 : vector<16x1xf32>
    %20 = vector.broadcast %11 : vector<16x1xf32> to vector<16x512xf32>
    %21 = arith.subf %2, %20 : vector<16x512xf32>
    %22 = vector.broadcast %19 : vector<16x1xf32> to vector<16x512xf32>
    %23 = arith.mulf %21, %22 : vector<16x512xf32>
    %24 = vector.broadcast %4 : vector<16x1xf32> to vector<16x512xf32>
    %25 = arith.addf %23, %24 : vector<16x512xf32>
    %cst_12 = arith.constant 0.000000e+00 : f32
    %26 = vector.broadcast %cst_12 : f32 to vector<16x512xf32>
    %27 = arith.maximumf %25, %26 : vector<16x512xf32>
    %c0_13 = arith.constant 0 : index
    %c0_14 = arith.constant 0 : index
    %28 = vector.load %arg1[%c0_13, %c0_14] : memref<1x512xi32, #tpu.memory_space<vmem>>, vector<1x512xi32>
    %c0_15 = arith.constant 0 : index
    %c0_16 = arith.constant 0 : index
    %29 = vector.load %arg2[%c0_15, %c0_16] : memref<1x512xi32, #tpu.memory_space<vmem>>, vector<1x512xi32>
    %c17_i32 = arith.constant 17 : i32
    %30 = tpu.dynamic_rotate %27 by %c17_i32 dim 1 : vector<16x512xf32>, i32 -> vector<16x512xf32>
    %c-1_i32 = arith.constant -1 : i32
    %31 = vector.broadcast %c-1_i32 : i32 to vector<1x512xi32>
    %32 = arith.addi %28, %31 : vector<1x512xi32>
    %c0_i32 = arith.constant 0 : i32
    %33 = vector.broadcast %c0_i32 : i32 to vector<1x512xi32>
    %34 = arith.cmpi sge, %32, %33 : vector<1x512xi32>
    %c-1_i32_17 = arith.constant -1 : i32
    %35 = vector.broadcast %c-1_i32_17 : i32 to vector<1x512xi32>
    %36 = arith.addi %28, %35 : vector<1x512xi32>
    %c16_i32 = arith.constant 16 : i32
    %37 = vector.broadcast %c16_i32 : i32 to vector<1x512xi32>
    %38 = arith.cmpi slt, %36, %37 : vector<1x512xi32>
    %39 = arith.andi %34, %38 : vector<1x512xi1>
    %c-1_i32_18 = arith.constant -1 : i32
    %40 = vector.broadcast %c-1_i32_18 : i32 to vector<1x512xi32>
    %41 = arith.addi %29, %40 : vector<1x512xi32>
    %c0_i32_19 = arith.constant 0 : i32
    %42 = vector.broadcast %c0_i32_19 : i32 to vector<1x512xi32>
    %43 = arith.cmpi sge, %41, %42 : vector<1x512xi32>
    %44 = arith.andi %39, %43 : vector<1x512xi1>
    %c-1_i32_20 = arith.constant -1 : i32
    %45 = vector.broadcast %c-1_i32_20 : i32 to vector<1x512xi32>
    %46 = arith.addi %29, %45 : vector<1x512xi32>
    %c16_i32_21 = arith.constant 16 : i32
    %47 = vector.broadcast %c16_i32_21 : i32 to vector<1x512xi32>
    %48 = arith.cmpi slt, %46, %47 : vector<1x512xi32>
    %49 = arith.andi %44, %48 : vector<1x512xi1>
    %cst_22 = arith.constant 0.000000e+00 : f32
    %50 = vector.shape_cast %49 : vector<1x512xi1> to vector<1x512xi1>
    %51 = vector.broadcast %50 : vector<1x512xi1> to vector<16x512xi1>
    %52 = vector.broadcast %cst_22 : f32 to vector<16x512xf32>
    %53 = arith.select %51, %30, %52 : vector<16x512xi1>, vector<16x512xf32>
    %c16_i32_23 = arith.constant 16 : i32
    %54 = tpu.dynamic_rotate %27 by %c16_i32_23 dim 1 : vector<16x512xf32>, i32 -> vector<16x512xf32>
    %c-1_i32_24 = arith.constant -1 : i32
    %55 = vector.broadcast %c-1_i32_24 : i32 to vector<1x512xi32>
    %56 = arith.addi %28, %55 : vector<1x512xi32>
    %c0_i32_25 = arith.constant 0 : i32
    %57 = vector.broadcast %c0_i32_25 : i32 to vector<1x512xi32>
    %58 = arith.cmpi sge, %56, %57 : vector<1x512xi32>
    %c-1_i32_26 = arith.constant -1 : i32
    %59 = vector.broadcast %c-1_i32_26 : i32 to vector<1x512xi32>
    %60 = arith.addi %28, %59 : vector<1x512xi32>
    %c16_i32_27 = arith.constant 16 : i32
    %61 = vector.broadcast %c16_i32_27 : i32 to vector<1x512xi32>
    %62 = arith.cmpi slt, %60, %61 : vector<1x512xi32>
    %63 = arith.andi %58, %62 : vector<1x512xi1>
    %c0_i32_28 = arith.constant 0 : i32
    %64 = vector.broadcast %c0_i32_28 : i32 to vector<1x512xi32>
    %65 = arith.addi %29, %64 : vector<1x512xi32>
    %c0_i32_29 = arith.constant 0 : i32
    %66 = vector.broadcast %c0_i32_29 : i32 to vector<1x512xi32>
    %67 = arith.cmpi sge, %65, %66 : vector<1x512xi32>
    %68 = arith.andi %63, %67 : vector<1x512xi1>
    %c0_i32_30 = arith.constant 0 : i32
    %69 = vector.broadcast %c0_i32_30 : i32 to vector<1x512xi32>
    %70 = arith.addi %29, %69 : vector<1x512xi32>
    %c16_i32_31 = arith.constant 16 : i32
    %71 = vector.broadcast %c16_i32_31 : i32 to vector<1x512xi32>
    %72 = arith.cmpi slt, %70, %71 : vector<1x512xi32>
    %73 = arith.andi %68, %72 : vector<1x512xi1>
    %cst_32 = arith.constant 0.000000e+00 : f32
    %74 = vector.shape_cast %73 : vector<1x512xi1> to vector<1x512xi1>
    %75 = vector.broadcast %74 : vector<1x512xi1> to vector<16x512xi1>
    %76 = vector.broadcast %cst_32 : f32 to vector<16x512xf32>
    %77 = arith.select %75, %54, %76 : vector<16x512xi1>, vector<16x512xf32>
    %c15_i32 = arith.constant 15 : i32
    %78 = tpu.dynamic_rotate %27 by %c15_i32 dim 1 : vector<16x512xf32>, i32 -> vector<16x512xf32>
    %c-1_i32_33 = arith.constant -1 : i32
    %79 = vector.broadcast %c-1_i32_33 : i32 to vector<1x512xi32>
    %80 = arith.addi %28, %79 : vector<1x512xi32>
    %c0_i32_34 = arith.constant 0 : i32
    %81 = vector.broadcast %c0_i32_34 : i32 to vector<1x512xi32>
    %82 = arith.cmpi sge, %80, %81 : vector<1x512xi32>
    %c-1_i32_35 = arith.constant -1 : i32
    %83 = vector.broadcast %c-1_i32_35 : i32 to vector<1x512xi32>
    %84 = arith.addi %28, %83 : vector<1x512xi32>
    %c16_i32_36 = arith.constant 16 : i32
    %85 = vector.broadcast %c16_i32_36 : i32 to vector<1x512xi32>
    %86 = arith.cmpi slt, %84, %85 : vector<1x512xi32>
    %87 = arith.andi %82, %86 : vector<1x512xi1>
    %c1_i32 = arith.constant 1 : i32
    %88 = vector.broadcast %c1_i32 : i32 to vector<1x512xi32>
    %89 = arith.addi %29, %88 : vector<1x512xi32>
    %c0_i32_37 = arith.constant 0 : i32
    %90 = vector.broadcast %c0_i32_37 : i32 to vector<1x512xi32>
    %91 = arith.cmpi sge, %89, %90 : vector<1x512xi32>
    %92 = arith.andi %87, %91 : vector<1x512xi1>
    %c1_i32_38 = arith.constant 1 : i32
    %93 = vector.broadcast %c1_i32_38 : i32 to vector<1x512xi32>
    %94 = arith.addi %29, %93 : vector<1x512xi32>
    %c16_i32_39 = arith.constant 16 : i32
    %95 = vector.broadcast %c16_i32_39 : i32 to vector<1x512xi32>
    %96 = arith.cmpi slt, %94, %95 : vector<1x512xi32>
    %97 = arith.andi %92, %96 : vector<1x512xi1>
    %cst_40 = arith.constant 0.000000e+00 : f32
    %98 = vector.shape_cast %97 : vector<1x512xi1> to vector<1x512xi1>
    %99 = vector.broadcast %98 : vector<1x512xi1> to vector<16x512xi1>
    %100 = vector.broadcast %cst_40 : f32 to vector<16x512xf32>
    %101 = arith.select %99, %78, %100 : vector<16x512xi1>, vector<16x512xf32>
    %c1_i32_41 = arith.constant 1 : i32
    %102 = tpu.dynamic_rotate %27 by %c1_i32_41 dim 1 : vector<16x512xf32>, i32 -> vector<16x512xf32>
    %c0_i32_42 = arith.constant 0 : i32
    %103 = vector.broadcast %c0_i32_42 : i32 to vector<1x512xi32>
    %104 = arith.addi %28, %103 : vector<1x512xi32>
    %c0_i32_43 = arith.constant 0 : i32
    %105 = vector.broadcast %c0_i32_43 : i32 to vector<1x512xi32>
    %106 = arith.cmpi sge, %104, %105 : vector<1x512xi32>
    %c0_i32_44 = arith.constant 0 : i32
    %107 = vector.broadcast %c0_i32_44 : i32 to vector<1x512xi32>
    %108 = arith.addi %28, %107 : vector<1x512xi32>
    %c16_i32_45 = arith.constant 16 : i32
    %109 = vector.broadcast %c16_i32_45 : i32 to vector<1x512xi32>
    %110 = arith.cmpi slt, %108, %109 : vector<1x512xi32>
    %111 = arith.andi %106, %110 : vector<1x512xi1>
    %c-1_i32_46 = arith.constant -1 : i32
    %112 = vector.broadcast %c-1_i32_46 : i32 to vector<1x512xi32>
    %113 = arith.addi %29, %112 : vector<1x512xi32>
    %c0_i32_47 = arith.constant 0 : i32
    %114 = vector.broadcast %c0_i32_47 : i32 to vector<1x512xi32>
    %115 = arith.cmpi sge, %113, %114 : vector<1x512xi32>
    %116 = arith.andi %111, %115 : vector<1x512xi1>
    %c-1_i32_48 = arith.constant -1 : i32
    %117 = vector.broadcast %c-1_i32_48 : i32 to vector<1x512xi32>
    %118 = arith.addi %29, %117 : vector<1x512xi32>
    %c16_i32_49 = arith.constant 16 : i32
    %119 = vector.broadcast %c16_i32_49 : i32 to vector<1x512xi32>
    %120 = arith.cmpi slt, %118, %119 : vector<1x512xi32>
    %121 = arith.andi %116, %120 : vector<1x512xi1>
    %cst_50 = arith.constant 0.000000e+00 : f32
    %122 = vector.shape_cast %121 : vector<1x512xi1> to vector<1x512xi1>
    %123 = vector.broadcast %122 : vector<1x512xi1> to vector<16x512xi1>
    %124 = vector.broadcast %cst_50 : f32 to vector<16x512xf32>
    %125 = arith.select %123, %102, %124 : vector<16x512xi1>, vector<16x512xf32>
    %c0_i32_51 = arith.constant 0 : i32
    %126 = vector.broadcast %c0_i32_51 : i32 to vector<1x512xi32>
    %127 = arith.addi %28, %126 : vector<1x512xi32>
    %c0_i32_52 = arith.constant 0 : i32
    %128 = vector.broadcast %c0_i32_52 : i32 to vector<1x512xi32>
    %129 = arith.cmpi sge, %127, %128 : vector<1x512xi32>
    %c0_i32_53 = arith.constant 0 : i32
    %130 = vector.broadcast %c0_i32_53 : i32 to vector<1x512xi32>
    %131 = arith.addi %28, %130 : vector<1x512xi32>
    %c16_i32_54 = arith.constant 16 : i32
    %132 = vector.broadcast %c16_i32_54 : i32 to vector<1x512xi32>
    %133 = arith.cmpi slt, %131, %132 : vector<1x512xi32>
    %134 = arith.andi %129, %133 : vector<1x512xi1>
    %c0_i32_55 = arith.constant 0 : i32
    %135 = vector.broadcast %c0_i32_55 : i32 to vector<1x512xi32>
    %136 = arith.addi %29, %135 : vector<1x512xi32>
    %c0_i32_56 = arith.constant 0 : i32
    %137 = vector.broadcast %c0_i32_56 : i32 to vector<1x512xi32>
    %138 = arith.cmpi sge, %136, %137 : vector<1x512xi32>
    %139 = arith.andi %134, %138 : vector<1x512xi1>
    %c0_i32_57 = arith.constant 0 : i32
    %140 = vector.broadcast %c0_i32_57 : i32 to vector<1x512xi32>
    %141 = arith.addi %29, %140 : vector<1x512xi32>
    %c16_i32_58 = arith.constant 16 : i32
    %142 = vector.broadcast %c16_i32_58 : i32 to vector<1x512xi32>
    %143 = arith.cmpi slt, %141, %142 : vector<1x512xi32>
    %144 = arith.andi %139, %143 : vector<1x512xi1>
    %cst_59 = arith.constant 0.000000e+00 : f32
    %145 = vector.shape_cast %144 : vector<1x512xi1> to vector<1x512xi1>
    %146 = vector.broadcast %145 : vector<1x512xi1> to vector<16x512xi1>
    %147 = vector.broadcast %cst_59 : f32 to vector<16x512xf32>
    %148 = arith.select %146, %27, %147 : vector<16x512xi1>, vector<16x512xf32>
    %c511_i32 = arith.constant 511 : i32
    %149 = tpu.dynamic_rotate %27 by %c511_i32 dim 1 : vector<16x512xf32>, i32 -> vector<16x512xf32>
    %c0_i32_60 = arith.constant 0 : i32
    %150 = vector.broadcast %c0_i32_60 : i32 to vector<1x512xi32>
    %151 = arith.addi %28, %150 : vector<1x512xi32>
    %c0_i32_61 = arith.constant 0 : i32
    %152 = vector.broadcast %c0_i32_61 : i32 to vector<1x512xi32>
    %153 = arith.cmpi sge, %151, %152 : vector<1x512xi32>
    %c0_i32_62 = arith.constant 0 : i32
    %154 = vector.broadcast %c0_i32_62 : i32 to vector<1x512xi32>
    %155 = arith.addi %28, %154 : vector<1x512xi32>
    %c16_i32_63 = arith.constant 16 : i32
    %156 = vector.broadcast %c16_i32_63 : i32 to vector<1x512xi32>
    %157 = arith.cmpi slt, %155, %156 : vector<1x512xi32>
    %158 = arith.andi %153, %157 : vector<1x512xi1>
    %c1_i32_64 = arith.constant 1 : i32
    %159 = vector.broadcast %c1_i32_64 : i32 to vector<1x512xi32>
    %160 = arith.addi %29, %159 : vector<1x512xi32>
    %c0_i32_65 = arith.constant 0 : i32
    %161 = vector.broadcast %c0_i32_65 : i32 to vector<1x512xi32>
    %162 = arith.cmpi sge, %160, %161 : vector<1x512xi32>
    %163 = arith.andi %158, %162 : vector<1x512xi1>
    %c1_i32_66 = arith.constant 1 : i32
    %164 = vector.broadcast %c1_i32_66 : i32 to vector<1x512xi32>
    %165 = arith.addi %29, %164 : vector<1x512xi32>
    %c16_i32_67 = arith.constant 16 : i32
    %166 = vector.broadcast %c16_i32_67 : i32 to vector<1x512xi32>
    %167 = arith.cmpi slt, %165, %166 : vector<1x512xi32>
    %168 = arith.andi %163, %167 : vector<1x512xi1>
    %cst_68 = arith.constant 0.000000e+00 : f32
    %169 = vector.shape_cast %168 : vector<1x512xi1> to vector<1x512xi1>
    %170 = vector.broadcast %169 : vector<1x512xi1> to vector<16x512xi1>
    %171 = vector.broadcast %cst_68 : f32 to vector<16x512xf32>
    %172 = arith.select %170, %149, %171 : vector<16x512xi1>, vector<16x512xf32>
    %c497_i32 = arith.constant 497 : i32
    %173 = tpu.dynamic_rotate %27 by %c497_i32 dim 1 : vector<16x512xf32>, i32 -> vector<16x512xf32>
    %c1_i32_69 = arith.constant 1 : i32
    %174 = vector.broadcast %c1_i32_69 : i32 to vector<1x512xi32>
    %175 = arith.addi %28, %174 : vector<1x512xi32>
    %c0_i32_70 = arith.constant 0 : i32
    %176 = vector.broadcast %c0_i32_70 : i32 to vector<1x512xi32>
    %177 = arith.cmpi sge, %175, %176 : vector<1x512xi32>
    %c1_i32_71 = arith.constant 1 : i32
    %178 = vector.broadcast %c1_i32_71 : i32 to vector<1x512xi32>
    %179 = arith.addi %28, %178 : vector<1x512xi32>
    %c16_i32_72 = arith.constant 16 : i32
    %180 = vector.broadcast %c16_i32_72 : i32 to vector<1x512xi32>
    %181 = arith.cmpi slt, %179, %180 : vector<1x512xi32>
    %182 = arith.andi %177, %181 : vector<1x512xi1>
    %c-1_i32_73 = arith.constant -1 : i32
    %183 = vector.broadcast %c-1_i32_73 : i32 to vector<1x512xi32>
    %184 = arith.addi %29, %183 : vector<1x512xi32>
    %c0_i32_74 = arith.constant 0 : i32
    %185 = vector.broadcast %c0_i32_74 : i32 to vector<1x512xi32>
    %186 = arith.cmpi sge, %184, %185 : vector<1x512xi32>
    %187 = arith.andi %182, %186 : vector<1x512xi1>
    %c-1_i32_75 = arith.constant -1 : i32
    %188 = vector.broadcast %c-1_i32_75 : i32 to vector<1x512xi32>
    %189 = arith.addi %29, %188 : vector<1x512xi32>
    %c16_i32_76 = arith.constant 16 : i32
    %190 = vector.broadcast %c16_i32_76 : i32 to vector<1x512xi32>
    %191 = arith.cmpi slt, %189, %190 : vector<1x512xi32>
    %192 = arith.andi %187, %191 : vector<1x512xi1>
    %cst_77 = arith.constant 0.000000e+00 : f32
    %193 = vector.shape_cast %192 : vector<1x512xi1> to vector<1x512xi1>
    %194 = vector.broadcast %193 : vector<1x512xi1> to vector<16x512xi1>
    %195 = vector.broadcast %cst_77 : f32 to vector<16x512xf32>
    %196 = arith.select %194, %173, %195 : vector<16x512xi1>, vector<16x512xf32>
    %c496_i32 = arith.constant 496 : i32
    %197 = tpu.dynamic_rotate %27 by %c496_i32 dim 1 : vector<16x512xf32>, i32 -> vector<16x512xf32>
    %c1_i32_78 = arith.constant 1 : i32
    %198 = vector.broadcast %c1_i32_78 : i32 to vector<1x512xi32>
    %199 = arith.addi %28, %198 : vector<1x512xi32>
    %c0_i32_79 = arith.constant 0 : i32
    %200 = vector.broadcast %c0_i32_79 : i32 to vector<1x512xi32>
    %201 = arith.cmpi sge, %199, %200 : vector<1x512xi32>
    %c1_i32_80 = arith.constant 1 : i32
    %202 = vector.broadcast %c1_i32_80 : i32 to vector<1x512xi32>
    %203 = arith.addi %28, %202 : vector<1x512xi32>
    %c16_i32_81 = arith.constant 16 : i32
    %204 = vector.broadcast %c16_i32_81 : i32 to vector<1x512xi32>
    %205 = arith.cmpi slt, %203, %204 : vector<1x512xi32>
    %206 = arith.andi %201, %205 : vector<1x512xi1>
    %c0_i32_82 = arith.constant 0 : i32
    %207 = vector.broadcast %c0_i32_82 : i32 to vector<1x512xi32>
    %208 = arith.addi %29, %207 : vector<1x512xi32>
    %c0_i32_83 = arith.constant 0 : i32
    %209 = vector.broadcast %c0_i32_83 : i32 to vector<1x512xi32>
    %210 = arith.cmpi sge, %208, %209 : vector<1x512xi32>
    %211 = arith.andi %206, %210 : vector<1x512xi1>
    %c0_i32_84 = arith.constant 0 : i32
    %212 = vector.broadcast %c0_i32_84 : i32 to vector<1x512xi32>
    %213 = arith.addi %29, %212 : vector<1x512xi32>
    %c16_i32_85 = arith.constant 16 : i32
    %214 = vector.broadcast %c16_i32_85 : i32 to vector<1x512xi32>
    %215 = arith.cmpi slt, %213, %214 : vector<1x512xi32>
    %216 = arith.andi %211, %215 : vector<1x512xi1>
    %cst_86 = arith.constant 0.000000e+00 : f32
    %217 = vector.shape_cast %216 : vector<1x512xi1> to vector<1x512xi1>
    %218 = vector.broadcast %217 : vector<1x512xi1> to vector<16x512xi1>
    %219 = vector.broadcast %cst_86 : f32 to vector<16x512xf32>
    %220 = arith.select %218, %197, %219 : vector<16x512xi1>, vector<16x512xf32>
    %c495_i32 = arith.constant 495 : i32
    %221 = tpu.dynamic_rotate %27 by %c495_i32 dim 1 : vector<16x512xf32>, i32 -> vector<16x512xf32>
    %c1_i32_87 = arith.constant 1 : i32
    %222 = vector.broadcast %c1_i32_87 : i32 to vector<1x512xi32>
    %223 = arith.addi %28, %222 : vector<1x512xi32>
    %c0_i32_88 = arith.constant 0 : i32
    %224 = vector.broadcast %c0_i32_88 : i32 to vector<1x512xi32>
    %225 = arith.cmpi sge, %223, %224 : vector<1x512xi32>
    %c1_i32_89 = arith.constant 1 : i32
    %226 = vector.broadcast %c1_i32_89 : i32 to vector<1x512xi32>
    %227 = arith.addi %28, %226 : vector<1x512xi32>
    %c16_i32_90 = arith.constant 16 : i32
    %228 = vector.broadcast %c16_i32_90 : i32 to vector<1x512xi32>
    %229 = arith.cmpi slt, %227, %228 : vector<1x512xi32>
    %230 = arith.andi %225, %229 : vector<1x512xi1>
    %c1_i32_91 = arith.constant 1 : i32
    %231 = vector.broadcast %c1_i32_91 : i32 to vector<1x512xi32>
    %232 = arith.addi %29, %231 : vector<1x512xi32>
    %c0_i32_92 = arith.constant 0 : i32
    %233 = vector.broadcast %c0_i32_92 : i32 to vector<1x512xi32>
    %234 = arith.cmpi sge, %232, %233 : vector<1x512xi32>
    %235 = arith.andi %230, %234 : vector<1x512xi1>
    %c1_i32_93 = arith.constant 1 : i32
    %236 = vector.broadcast %c1_i32_93 : i32 to vector<1x512xi32>
    %237 = arith.addi %29, %236 : vector<1x512xi32>
    %c16_i32_94 = arith.constant 16 : i32
    %238 = vector.broadcast %c16_i32_94 : i32 to vector<1x512xi32>
    %239 = arith.cmpi slt, %237, %238 : vector<1x512xi32>
    %240 = arith.andi %235, %239 : vector<1x512xi1>
    %cst_95 = arith.constant 0.000000e+00 : f32
    %241 = vector.shape_cast %240 : vector<1x512xi1> to vector<1x512xi1>
    %242 = vector.broadcast %241 : vector<1x512xi1> to vector<16x512xi1>
    %243 = vector.broadcast %cst_95 : f32 to vector<16x512xf32>
    %244 = arith.select %242, %221, %243 : vector<16x512xi1>, vector<16x512xf32>
    %245 = tpu.concatenate %53, %77, %101, %125, %148, %172, %196, %220, %244 in 0 : vector<16x512xf32>, vector<16x512xf32>, vector<16x512xf32>, vector<16x512xf32>, vector<16x512xf32>, vector<16x512xf32>, vector<16x512xf32>, vector<16x512xf32>, vector<16x512xf32> -> vector<144x512xf32>
    %c0_96 = arith.constant 0 : index
    %c0_97 = arith.constant 0 : index
    %246 = vector.load %arg6[%c0_96, %c0_97] : memref<16x144xf32, #tpu.memory_space<vmem>>, vector<16x144xf32>
    %cst_98 = arith.constant dense<0.000000e+00> : vector<16x512xf32>
    %247 = tpu.matmul %246, %245, %cst_98 {dimension_numbers = #tpu.dot_dimension_numbers<[1], [0], [0], [1], [0, 0, 1, 1], [], []>} : vector<16x144xf32>, vector<144x512xf32>, vector<16x512xf32> -> vector<16x512xf32>
    %c0_99 = arith.constant 0 : index
    %c0_100 = arith.constant 0 : index
    %248 = vector.load %arg7[%c0_99, %c0_100] : memref<16x1xf32, #tpu.memory_space<vmem>>, vector<16x1xf32>
    %c0_101 = arith.constant 0 : index
    %c0_102 = arith.constant 0 : index
    %249 = vector.load %arg8[%c0_101, %c0_102] : memref<16x1xf32, #tpu.memory_space<vmem>>, vector<16x1xf32>
    %cst_103 = arith.constant dense<0.000000e+00> : vector<16xf32>
    %250 = vector.multi_reduction <add>, %247, %cst_103 [1] : vector<16x512xf32> to vector<16xf32>
    %251 = vector.shape_cast %250 : vector<16xf32> to vector<16x1xf32>
    %252 = arith.mulf %247, %247 : vector<16x512xf32>
    %cst_104 = arith.constant dense<0.000000e+00> : vector<16xf32>
    %253 = vector.multi_reduction <add>, %252, %cst_104 [1] : vector<16x512xf32> to vector<16xf32>
    %254 = vector.shape_cast %253 : vector<16xf32> to vector<16x1xf32>
    %cst_105 = arith.constant 0.001953125 : f32
    %255 = vector.broadcast %cst_105 : f32 to vector<16x1xf32>
    %256 = arith.mulf %251, %255 : vector<16x1xf32>
    %cst_106 = arith.constant 0.001953125 : f32
    %257 = vector.broadcast %cst_106 : f32 to vector<16x1xf32>
    %258 = arith.mulf %254, %257 : vector<16x1xf32>
    %259 = arith.mulf %256, %256 : vector<16x1xf32>
    %260 = arith.subf %258, %259 : vector<16x1xf32>
    %cst_107 = arith.constant 9.99999974E-6 : f32
    %261 = vector.broadcast %cst_107 : f32 to vector<16x1xf32>
    %262 = arith.addf %260, %261 : vector<16x1xf32>
    %263 = math.rsqrt %262 : vector<16x1xf32>
    %264 = arith.mulf %263, %248 : vector<16x1xf32>
    %265 = vector.broadcast %256 : vector<16x1xf32> to vector<16x512xf32>
    %266 = arith.subf %247, %265 : vector<16x512xf32>
    %267 = vector.broadcast %264 : vector<16x1xf32> to vector<16x512xf32>
    %268 = arith.mulf %266, %267 : vector<16x512xf32>
    %269 = vector.broadcast %249 : vector<16x1xf32> to vector<16x512xf32>
    %270 = arith.addf %268, %269 : vector<16x512xf32>
    %cst_108 = arith.constant 0.000000e+00 : f32
    %271 = vector.broadcast %cst_108 : f32 to vector<16x512xf32>
    %272 = arith.maximumf %270, %271 : vector<16x512xf32>
    %c0_109 = arith.constant 0 : index
    %c0_110 = arith.constant 0 : index
    %273 = vector.load %arg9[%c0_109, %c0_110] : memref<32x16xf32, #tpu.memory_space<vmem>>, vector<32x16xf32>
    %cst_111 = arith.constant dense<0.000000e+00> : vector<32x512xf32>
    %274 = tpu.matmul %273, %272, %cst_111 {dimension_numbers = #tpu.dot_dimension_numbers<[1], [0], [0], [1], [0, 0, 1, 1], [], []>} : vector<32x16xf32>, vector<16x512xf32>, vector<32x512xf32> -> vector<32x512xf32>
    %c0_112 = arith.constant 0 : index
    %c0_113 = arith.constant 0 : index
    %275 = vector.load %arg10[%c0_112, %c0_113] : memref<32x1xf32, #tpu.memory_space<vmem>>, vector<32x1xf32>
    %c0_114 = arith.constant 0 : index
    %c0_115 = arith.constant 0 : index
    %276 = vector.load %arg11[%c0_114, %c0_115] : memref<32x1xf32, #tpu.memory_space<vmem>>, vector<32x1xf32>
    %cst_116 = arith.constant dense<0.000000e+00> : vector<32xf32>
    %277 = vector.multi_reduction <add>, %274, %cst_116 [1] : vector<32x512xf32> to vector<32xf32>
    %278 = vector.shape_cast %277 : vector<32xf32> to vector<32x1xf32>
    %279 = arith.mulf %274, %274 : vector<32x512xf32>
    %cst_117 = arith.constant dense<0.000000e+00> : vector<32xf32>
    %280 = vector.multi_reduction <add>, %279, %cst_117 [1] : vector<32x512xf32> to vector<32xf32>
    %281 = vector.shape_cast %280 : vector<32xf32> to vector<32x1xf32>
    %cst_118 = arith.constant 0.001953125 : f32
    %282 = vector.broadcast %cst_118 : f32 to vector<32x1xf32>
    %283 = arith.mulf %278, %282 : vector<32x1xf32>
    %cst_119 = arith.constant 0.001953125 : f32
    %284 = vector.broadcast %cst_119 : f32 to vector<32x1xf32>
    %285 = arith.mulf %281, %284 : vector<32x1xf32>
    %286 = arith.mulf %283, %283 : vector<32x1xf32>
    %287 = arith.subf %285, %286 : vector<32x1xf32>
    %cst_120 = arith.constant 9.99999974E-6 : f32
    %288 = vector.broadcast %cst_120 : f32 to vector<32x1xf32>
    %289 = arith.addf %287, %288 : vector<32x1xf32>
    %290 = math.rsqrt %289 : vector<32x1xf32>
    %291 = arith.mulf %290, %275 : vector<32x1xf32>
    %292 = vector.broadcast %283 : vector<32x1xf32> to vector<32x512xf32>
    %293 = arith.subf %274, %292 : vector<32x512xf32>
    %294 = vector.broadcast %291 : vector<32x1xf32> to vector<32x512xf32>
    %295 = arith.mulf %293, %294 : vector<32x512xf32>
    %296 = vector.broadcast %276 : vector<32x1xf32> to vector<32x512xf32>
    %297 = arith.addf %295, %296 : vector<32x512xf32>
    %298 = arith.addf %297, %0 : vector<32x512xf32>
    %cst_121 = arith.constant 0.000000e+00 : f32
    %299 = vector.broadcast %cst_121 : f32 to vector<32x512xf32>
    %300 = arith.maximumf %298, %299 : vector<32x512xf32>
    %c0_122 = arith.constant 0 : index
    %c0_123 = arith.constant 0 : index
    %301 = vector.load %arg12[%c0_122, %c0_123] : memref<32x512xf32, #tpu.memory_space<vmem>>, vector<32x512xf32>
    tpu.vector_store %arg12[%c0_122, %c0_123], %300 {strides = array<i32>} : memref<32x512xf32, #tpu.memory_space<vmem>>, vector<32x512xf32>,
    return
  }
}

</mosaic_0001>

<bundles_post_ra>
// kernel: tpu_custom_call.1
= control target key start
LH: loop header
LB: loop body
LE: loop exit
PB: predicated region body
PF: predicated region fallthrough
CT: control target
= control target key end

     0   :  { %17 = vsyncpa [#allocation3], 0  ;;  %s3445_s0 = inlined_call_operand.vmem [shape: f32[32,512], index: 0, kind: input, shape index: {}]   ;;  %s3446_s1 = inlined_call_operand.hbm [shape: s32[1,512], index: 1, kind: input, shape index: {}]   ;;  %s3447_s2 = inlined_call_operand.hbm [shape: s32[1,512], index: 2, kind: input, shape index: {}]   ;;  %s3448_s3 = inlined_call_operand.vmem [shape: f32[16,32], index: 3, kind: input, shape index: {}]   ;;  %s3449_s4 = inlined_call_operand.vmem [shape: f32[16,1], index: 4, kind: input, shape index: {}]   ;;  %s3450_s5 = inlined_call_operand.vmem [shape: f32[16,1], index: 5, kind: input, shape index: {}]   ;;  %s3451_s6 = inlined_call_operand.vmem [shape: f32[16,144], index: 6, kind: input, shape index: {}]   ;;  %s3452_s7 = inlined_call_operand.vmem [shape: f32[16,1], index: 7, kind: input, shape index: {}]   ;;  %s3453_s8 = inlined_call_operand.vmem [shape: f32[16,1], index: 8, kind: input, shape index: {}]   ;;  %s3454_s9 = inlined_call_operand.vmem [shape: f32[32,16], index: 9, kind: input, shape index: {}]   ;;  %s3455_s10 = inlined_call_operand.vmem [shape: f32[32,1], index: 10, kind: input, shape index: {}]   ;;  %s3456_s11 = inlined_call_operand.vmem [shape: f32[32,1], index: 11, kind: input, shape index: {}]   ;;  %s3457_s12 = inlined_call_operand.hbm [shape: f32[32,512], index: 12, kind: output, shape index: {}]  }
   0x1   :  { %18 = vsyncpa [#allocation6], 0 }
   0x2   :  { %19 = vsyncpa [#allocation4], 0  ;;  %s2049_s21 = smov [#allocation2]   ;;  %s2050_s23 = smov [#allocation5]  }
   0x3   :  { %s28_s22 = sshll.u32 %s2049_s21, 4  ;;  %s38_s24 = sshll.u32 %s2050_s23, 4  ;;  %s29_s22 = int_to_ptr.vmem [resolvable:$true] %s28_s22  ;;  %s39_s24 = int_to_ptr.vmem [resolvable:$true] %s38_s24 }
   0x4   :  { %s1977_s27 = scalar_lea.hbm %s3446_s1, 64 }
   0x5   :  { %p1978_p0 = scmp.ne.s32.totalorder %s3446_s1, %s1977_s27  ;;  %p1981_p1 = scmp.lt.u32.totalorder %s1977_s27, %s3446_s1 }
   0x7   :  { %p1983_p2 = pnand %p1981_p1, %p1978_p0 }
   0x9   :  { %1986 = shalt.err (!%p1983_p2)
}
   0xa   :  { %s1987_s14 = scalar_lea.vmem %s29_s22, 64  ;;  %p1992_p4 = scmp.lt.s32.totalorder %s29_s22, %s29_s22 }
   0xb   :  { %p1988_p3 = scmp.ne.s32.totalorder %s29_s22, %s1987_s14  ;;  %p1993_p5 = scmp.lt.s32.totalorder %s1987_s14, %s1987_s14 }
   0xd   :  { %p1994_p6 = por %p1993_p5, %p1992_p4 }
   0xf   :  { %p1995_p7 = pnand %p1994_p6, %p1988_p3 }
  0x11   :  { %1998 = shalt.err (!%p1995_p7)
}
  0x12   :  { %31 = dma.hbm_to_vmem [thread:$0]  %s3446_s1, 64, %s29_s22, [#allocation3]  }
  0x13   :  { %s1999_s19 = scalar_lea.hbm %s3447_s2, 64 }
  0x14   :  { %p2000_p8 = scmp.ne.s32.totalorder %s3447_s2, %s1999_s19  ;;  %p2003_p9 = scmp.lt.u32.totalorder %s1999_s19, %s3447_s2 }
  0x16   :  { %p2005_p10 = pnand %p2003_p9, %p2000_p8 }
  0x18   :  { %2008 = shalt.err (!%p2005_p10)
}
  0x19   :  { %s2009_s26 = scalar_lea.vmem %s39_s24, 64  ;;  %p2014_p12 = scmp.lt.s32.totalorder %s39_s24, %s39_s24 }
  0x1a   :  { %p2010_p11 = scmp.ne.s32.totalorder %s39_s24, %s2009_s26  ;;  %p2015_p13 = scmp.lt.s32.totalorder %s2009_s26, %s2009_s26 }
  0x1c   :  { %p2016_p0 = por %p2015_p13, %p2014_p12 }
  0x1e   :  { %p2017_p1 = pnand %p2016_p0, %p2010_p11 }
  0x20   :  { %2020 = shalt.err (!%p2017_p1)
}
  0x21   :  { %41 = dma.hbm_to_vmem [thread:$0]  %s3447_s2, 64, %s39_s24, [#allocation6]  }
  0x22   :  { %2043 = dma.done.wait [#allocation3], 64  }
  0x23   :  { %2044 = vsyncadd [#allocation3], 4294967232 }
  0x24   :  { %2045 = dma.done.wait [#allocation6], 64  }
  0x25   :  { %2046 = vsyncadd [#allocation6], 4294967232  ;;  %v2051_v0 = vmov 0.0   ;;  %v67_v1 = vld [vmem:[%s3445_s0 + $0x8] sm:$0xff]  ;;  %v66_v3 = vld [vmem:[%s3445_s0] sm:$0xff]  ;;  %vm84_vm0 = vcmask 261120  }
  0x26   :  { %155 = vmatprep.mubr.f32.mxu0 %v2051_v0  ;;  %232 = vmatprep.mubr.f32.mxu1 %v2051_v0  ;;  %v71_v2 = vld [vmem:[%s3445_s0 + $0x28] sm:$0xff]  ;;  %v70_v5 = vld [vmem:[%s3445_s0 + $0x20] sm:$0xff]  ;;  %v69_v6 = vld [vmem:[%s3445_s0 + $0x18] sm:$0xff]  ;;  %v2052_v56 = vmov 0   ;;  %s2055_s30 = smov 15   ;;  %s2056_s13 = smov 1  }
  0x27   :  { %v1636_v4 = vpack.c.bf16 %v71_v2, %v67_v1  ;;  %v73_v7 = vld [vmem:[%s3445_s0 + $0x38] sm:$0xff]  ;;  %v1638_v8 = vpack.c.bf16 %v70_v5, %v66_v3  ;;  %v68_v10 = vld [vmem:[%s3445_s0 + $0x10] sm:$0xff]  ;;  %v75_v12 = vld [vmem:[%s3445_s0 + $0x48] sm:$0xff]  ;;  %1784 = vset.pattern.permute.xlu1 %v2052_v56  ;;  %1783 = vset.pattern.permute.xlu0 %v2052_v56  ;;  %s2057_s14 = smov 127   ;;  %s2058_s2 = smov 113   ;;  %vm3458_vm1 = vcmask 130048  }
  0x28   :  { %v1644_v9 = vpack.c.bf16 %v73_v7, %v69_v6  ;;  %v72_v11 = vld [vmem:[%s3445_s0 + $0x30] sm:$0xff]  ;;  %v79_v14 = vld [vmem:[%s3445_s0 + $0x68] sm:$0xff]  ;;  %v74_v15 = vld [vmem:[%s3445_s0 + $0x40] sm:$0xff]  ;;  %s2059_s24 = smov 112   ;;  %s2060_s15 = smov 111  }
  0x29   :  { %1637 = vmatprep.subr.bf16.mxu0 %v1636_v4  ;;  %v1646_v13 = vpack.c.bf16 %v72_v11, %v68_v10  ;;  %v78_v16 = vld [vmem:[%s3445_s0 + $0x60] sm:$0xff]  ;;  %v1640_v17 = vpack.c.bf16 %v79_v14, %v75_v12  ;;  %v77_v19 = vld [vmem:[%s3445_s0 + $0x58] sm:$0xff]  ;;  %v76_v21 = vld [vmem:[%s3445_s0 + $0x50] sm:$0xff] }
  0x2a   :  { %1639 = vmatpush1.bf16.msra.mxu0 %v1638_v8  ;;  %1645 = vmatprep.subr.bf16.mxu1 %v1644_v9  ;;  %v1642_v18 = vpack.c.bf16 %v78_v16, %v74_v15  ;;  %v81_v20 = vld [vmem:[%s3445_s0 + $0x78] sm:$0xff]  ;;  %v80_v23 = vld [vmem:[%s3445_s0 + $0x70] sm:$0xff]  ;;  %v82_v25 = vld [vmem:[%s3448_s3] sm:$0xff] }
  0x2b   :  { %1647 = vmatpush1.bf16.msra.mxu1 %v1646_v13  ;;  %v1648_v22 = vpack.c.bf16 %v81_v20, %v77_v19  ;;  %1641 = vmatprep.subr.bf16.mxu0 %v1640_v17  ;;  %v1650_v24 = vpack.c.bf16 %v80_v23, %v76_v21  ;;  %v83_v26 = vld [vmem:[%s3448_s3 + $0x8] sm:$0xff]  ;;  %v247_v55 = vld [vmem:[%s3450_s5] sm:$0xff] }
  0x2c   :  { %v245_v16 = vld [vmem:[%s3449_s4] sm:$0xff]  ;;  %v246_v19 = vld [vmem:[%s3449_s4 + $0x8] sm:$0xff]  ;;  %s2053_s4 = smov 16  }
  0x2d   :  { %1649 = vmatprep.subr.bf16.mxu1 %v1648_v22  ;;  %v248_v22 = vld [vmem:[%s3450_s5 + $0x8] sm:$0xff]  ;;  %s2054_s5 = smov 17  }
  0x2e   :  { %1643 = vmatpush1.bf16.msra.mxu0 %v1642_v18 }
  0x2f   :  { %1651 = vmatpush1.bf16.msra.mxu1 %v1650_v24 }
  0x31   :  { %1548 = vmatmul.mubr.msk.f32.vlgmr.msra.gmra.mrb[0].mxu0 %vm84_vm0, %v82_v25 }
  0x32   :  { %1550 = vmatmul.mubr.msk.f32.vlgmr.msra.gmra.mrb[0].mxu1 %vm84_vm0, %v82_v25  ;;  %161 = vmatprep.mubr.f32.mxu0 %v2051_v0 }
  0x33   :  { %238 = vmatprep.mubr.f32.mxu1 %v2051_v0 }
  0x35   :  { %1549 = vmatmul.mubr.msk.f32.gmra.mrb[2].mxu0 %vm84_vm0, %v83_v26 }
  0x36   :  { %1551 = vmatmul.mubr.msk.f32.gmra.mrb[2].mxu1 %vm84_vm0, %v83_v26 }
 0x104   :  { %v2211_v27 = vpop.f32.mrb[0].mxu0 }
 0x105   :  { %v259_v28 = vmul.f32 %v2211_v27, %v2211_v27  ;;  %v2215_v29 = vpop.f32.mrb[1].mxu0  ;;  %v2217_v30 = vpop.f32.mrb[0].mxu1 }
 0x106   :  { %v249_v31 = vadd.f32 %v2215_v29, %v2211_v27  ;;  %v260_v32 = vmul.f32 %v2215_v29, %v2215_v29  ;;  %v2223_v33 = vpop.f32.mrb[1].mxu1  ;;  %v261_v34 = vmul.f32 %v2217_v30, %v2217_v30 }
 0x107   :  { %v262_v46 = vmul.f32 %v2223_v33, %v2223_v33 }
 0x108   :  { %v2227_v35 = vpop.f32.mrb[2].mxu0  ;;  %v250_v36 = vadd.f32 %v249_v31, %v2217_v30  ;;  %v267_v37 = vadd.f32 %v260_v32, %v259_v28 }
 0x109   :  { %v263_v38 = vmul.f32 %v2227_v35, %v2227_v35  ;;  %v2232_v39 = vpop.f32.mrb[3].mxu0  ;;  %v2234_v40 = vpop.f32.mrb[2].mxu1 }
 0x10a   :  { %v254_v41 = vadd.f32 %v2232_v39, %v2227_v35  ;;  %v264_v42 = vmul.f32 %v2232_v39, %v2232_v39  ;;  %v265_v43 = vmul.f32 %v2234_v40, %v2234_v40  ;;  %v2242_v44 = vpop.f32.mrb[3].mxu1  ;;  %v251_v45 = vadd.f32 %v250_v36, %v2223_v33 }
 0x10b   :  { %v268_v47 = vadd.f32 %v267_v37, %v261_v34  ;;  %v266_v52 = vmul.f32 %v2242_v44, %v2242_v44 }
 0x10c   :  { %252 = vadd.xlane.f32.xlu0 %v251_v45  ;;  %v255_v48 = vadd.f32 %v254_v41, %v2234_v40  ;;  %v272_v49 = vadd.f32 %v264_v42, %v263_v38 }
 0x10d   :  { %v269_v50 = vadd.f32 %v268_v47, %v262_v46 }
 0x10e   :  { %v256_v51 = vadd.f32 %v255_v48, %v2242_v44  ;;  %v273_v53 = vadd.f32 %v272_v49, %v265_v43 }
 0x10f   :  { %270 = vadd.xlane.f32.xlu1 %v269_v50 }
 0x110   :  { %257 = vadd.xlane.f32.xlu0 %v256_v51  ;;  %v274_v54 = vadd.f32 %v273_v53, %v266_v52 }
 0x113   :  { %275 = vadd.xlane.f32.xlu1 %v274_v54 }
 0x124   :  { %319 = vperm.xlu1 %1784, %v247_v55  }
 0x199   :  { %v253_v57 = vpop.xlane.xlu0 %252 }
 0x19a   :  { %v277_v58 = vmul.f32 0.001953125, %v253_v57 }
 0x19c   :  { %v271_v59 = vpop.xlane.xlu1 %270  ;;  %v281_v60 = vmul.f32 %v277_v58, %v277_v58  ;;  %v291_v61 = vsub.f32 %v2211_v27, %v277_v58  ;;  %v292_v62 = vsub.f32 %v2215_v29, %v277_v58  ;;  %v293_v63 = vsub.f32 %v2217_v30, %v277_v58 }
 0x19d   :  { %v279_v1 = vmul.f32 0.001953125, %v271_v59  ;;  %v258_v2 = vpop.xlane.xlu0 %257  ;;  %v294_v3 = vsub.f32 %v2223_v33, %v277_v58 }
 0x19e   :  { %v278_v4 = vmul.f32 0.001953125, %v258_v2  ;;  %v361_v2 = vlaneseq }
 0x19f   :  { %v283_v5 = vsub.f32 %v279_v1, %v281_v60  ;;  %v846_v60 = vld [vmem:[%s3451_s6 + $0x8] sm:$0xff] }
 0x1a0   :  { %v276_v6 = vpop.xlane.xlu1 %275  ;;  %v282_v7 = vmul.f32 %v278_v4, %v278_v4  ;;  %v295_v8 = vsub.f32 %v2227_v35, %v278_v4  ;;  %v296_v9 = vsub.f32 %v2232_v39, %v278_v4  ;;  %v297_v10 = vsub.f32 %v2234_v40, %v278_v4  ;;  %1588 = vmatprep.mubr.msk.f32.mxu0 %vm3458_vm1, %v846_v60 }
 0x1a1   :  { %v285_v11 = vadd.f32 1e-05, %v283_v5  ;;  %v280_v12 = vmul.f32 0.001953125, %v276_v6  ;;  %v298_v13 = vsub.f32 %v2242_v44, %v278_v4  ;;  %1626 = vmatprep.mubr.msk.f32.mxu1 %vm3458_vm1, %v846_v60  ;;  %v383_v4 = vshrl.u32 %v361_v2, 7 }
 0x1a3   :  { %1945 = vrsqrt.f32 %v285_v11  ;;  %v284_v14 = vsub.f32 %v280_v12, %v282_v7  ;;  %v2306_v5 = vsub.s32 1, %v383_v4  ;;  %v2318_v12 = vsub.s32 0, %v383_v4 }
 0x1a4   :  { %v320_v23 = vpop.permute.xlu1 %319 }
 0x1a5   :  { %v286_v15 = vadd.f32 1e-05, %v284_v14 }
 0x1a7   :  { %1947 = vrsqrt.f32 %v286_v15 }
 0x1ad   :  { %v1946_v17 = vpop.eup %1945 }
 0x1ae   :  { %v289_v18 = vmul.f32 %v1946_v17, %v245_v16 }
 0x1b0   :  { %301 = vperm.xlu0 %1783, %v289_v18   ;;  %v2338_v18 = vsub.s32 2, %v383_v4 }
 0x1b1   :  { %v1948_v20 = vpop.eup %1947 }
 0x1b2   :  { %v290_v21 = vmul.f32 %v1948_v20, %v246_v19 }
 0x1b4   :  { %306 = vperm.xlu1 %1784, %v290_v21  }
 0x1b8   :  { %324 = vperm.xlu1 %1784, %v248_v22  }
 0x22f   :  { %v302_v24 = vpop.permute.xlu0 %301 }
 0x230   :  { %v309_v25 = vmul.f32 %v302_v24, %v291_v61  ;;  %v310_v26 = vmul.f32 %v302_v24, %v292_v62  ;;  %v311_v27 = vmul.f32 %v302_v24, %v293_v63  ;;  %v312_v28 = vmul.f32 %v302_v24, %v294_v3  ;;  %v2286_v61 = vld [vmem:[#allocation2] sm:$0xf]  ;;  %v2288_v62 = vld [vmem:[#allocation5] sm:$0xf] }
 0x231   :  { %v372_v63 = vadd.s32 4294967295, %v2286_v61  ;;  %v2292_v1 = vadd.s32 4294967295, %v2288_v62  ;;  %vm3462_vm9 = vcmp.ge.s32.totalorder %v2288_v62, 0  ;;  %v2311_v7 = vadd.s32 1, %v2288_v62 }
 0x232   :  { %v327_v30 = vadd.f32 %v320_v23, %v309_v25  ;;  %v328_v31 = vadd.f32 %v320_v23, %v310_v26  ;;  %v329_v32 = vadd.f32 %v320_v23, %v311_v27  ;;  %v330_v37 = vadd.f32 %v320_v23, %v312_v28 }
 0x233   :  { %v307_v29 = vpop.permute.xlu1 %306  ;;  %vm373_vm2 = vcmp.ge.s32.totalorder %v372_v63, 0  ;;  %vm374_vm3 = vcmp.lt.s32.totalorder %v372_v63, 16  ;;  %vm3459_vm5 = vcmp.ge.s32.totalorder %v2292_v1, 0  ;;  %vm3460_vm7 = vcmp.lt.s32.totalorder %v2292_v1, 16 }
 0x234   :  { %v313_v33 = vmul.f32 %v307_v29, %v295_v8  ;;  %v314_v34 = vmul.f32 %v307_v29, %v296_v9  ;;  %v315_v35 = vmul.f32 %v307_v29, %v297_v10  ;;  %v316_v36 = vmul.f32 %v307_v29, %v298_v13  ;;  %vm2294_vm4 = vmand %vm373_vm2, %vm374_vm3 }
 0x235   :  { %v335_v43 = vmax.f32 %v327_v30, 0.0  ;;  %v336_v44 = vmax.f32 %v328_v31, 0.0  ;;  %v337_v45 = vmax.f32 %v329_v32, 0.0  ;;  %v338_v50 = vmax.f32 %v330_v37, 0.0  ;;  %vm378_vm6 = vmand %vm2294_vm4, %vm3459_vm5 }
 0x236   :  { %vm380_vm8 = vmand %vm378_vm6, %vm3460_vm7  ;;  %v2315_v10 = vand.u32 127, %v361_v2  ;;  %vm3463_vm11 = vcmp.lt.s32.totalorder %v2288_v62, 16  ;;  %v2325_v13 = vsub.s32 3, %v383_v4  ;;  %vm3464_vm13 = vcmp.ge.s32.totalorder %v2311_v7, 0 }
 0x237   :  { %v325_v38 = vpop.permute.xlu1 %324  ;;  %v381_v6 = vsel %vm380_vm8, 1, %v2052_v56  ;;  %vm436_vm10 = vmand %vm2294_vm4, %vm3462_vm9  ;;  %vm3461_vm2 = vcmp.lt.s32.totalorder %v2311_v7, 16  ;;  %vm552_vm6 = vcmp.ge.s32.totalorder %v2286_v61, 0  ;;  %vm553_vm8 = vcmp.lt.s32.totalorder %v2286_v61, 16 }
 0x238   :  { %v331_v39 = vadd.f32 %v325_v38, %v313_v33  ;;  %v332_v40 = vadd.f32 %v325_v38, %v314_v34  ;;  %v333_v41 = vadd.f32 %v325_v38, %v315_v35  ;;  %v334_v42 = vadd.f32 %v325_v38, %v316_v36  ;;  %vm438_vm12 = vmand %vm436_vm10, %vm3463_vm11 }
 0x239   :  { %v389_v11 = vrot.slane %v381_v6, %v2306_v5  ;;  %vm363_vm14 = vcmp.lt.s32.totalorder %v2315_v10, 17  ;;  %v385_v17 = vrot.slane %v381_v6, %v2318_v12  ;;  %v397_v23 = vrot.slane %v381_v6, %v2325_v13  ;;  %vm495_vm0 = vmand %vm2294_vm4, %vm3464_vm13 }
 0x23a   :  { %v339_v46 = vmax.f32 %v331_v39, 0.0  ;;  %v340_v47 = vmax.f32 %v332_v40, 0.0  ;;  %v341_v48 = vmax.f32 %v333_v41, 0.0  ;;  %v342_v49 = vmax.f32 %v334_v42, 0.0  ;;  %vm497_vm10 = vmand %vm495_vm0, %vm3461_vm2 }
 0x23b   :  { %vm2333_vm15 = vcmp.eq.s32.totalorder %v389_v11, 1  ;;  %v2342_v24 = vsel %vm438_vm12, 1, %v2052_v56  ;;  %vm2360_vm4 = vcmp.eq.s32.totalorder %v385_v17, 1  ;;  %v393_v31 = vrot.slane %v381_v6, %v2338_v18  ;;  %vm2369_vm12 = vmand %vm552_vm6, %vm553_vm8 }
 0x23c   :  { %v1810_v51 = vpack.i.bf16 %v340_v47, %v336_v44  ;;  %v1785_v52 = vpack.i.bf16 %v339_v46, %v335_v43  ;;  %v1820_v53 = vpack.i.bf16 %v341_v48, %v337_v45  ;;  %v1795_v54 = vpack.i.bf16 %v342_v49, %v338_v50  ;;  %vm1653_vm3 = vmpackc.low %vm2333_vm15, %vm2333_vm15 }
 0x23d   :  { %v2273_v55 = vpack.c.bf16 %v340_v47, %v336_v44  ;;  %v2275_v57 = vpack.c.bf16 %v342_v49, %v338_v50  ;;  %v2277_v58 = vpack.c.bf16 %v339_v46, %v335_v43  ;;  %v2279_v59 = vpack.c.bf16 %v341_v48, %v337_v45  ;;  %vm1656_vm15 = vmpackc.low %vm2360_vm4, %vm2360_vm4 }
 0x23e   :  { %1811 = vrot.lane.b32.xlu0 %v1810_v51, %s2053_s4  ;;  %1786 = vrot.lane.b32.xlu1 %v1785_v52, %s2054_s5  ;;  %v447_v34 = vrot.slane %v2342_v24, %v2306_v5  ;;  %vm2380_vm1 = vcmp.eq.s32.totalorder %v397_v23, 1  ;;  %vm2386_vm0 = vcmp.eq.s32.totalorder %v393_v31, 1  ;;  %v498_v43 = vsel %vm497_vm10, 1, %v2052_v56  ;;  %vm2396_vm6 = vmand %vm2369_vm12, %vm3459_vm5 }
 0x23f   :  { %vm1707_vm8 = vmpackc.low %vm2380_vm1, %vm2380_vm1  ;;  %v443_v48 = vrot.slane %v2342_v24, %v2318_v12  ;;  %v455_v49 = vrot.slane %v2342_v24, %v2325_v13  ;;  %v451_v50 = vrot.slane %v2342_v24, %v2338_v18 }
 0x240   :  { %vm2403_vm4 = vcmp.eq.s32.totalorder %v447_v34, 1  ;;  %vm1710_vm10 = vmpackc.low %vm2386_vm0, %vm2386_vm0 }
 0x241   :  { %vm1659_vm1 = vmpackc.low %vm2403_vm4, %vm2403_vm4  ;;  %vm2469_vm0 = vcmp.eq.s32.totalorder %v451_v50, 1 }
 0x242   :  { %1821 = vrot.lane.b32.xlu0 %v1820_v53, %s2053_s4  ;;  %1791 = vrot.lane.b32.xlu1 %v1810_v51, %s2054_s5 }
 0x246   :  { %1831 = vrot.lane.b32.xlu0 %v1810_v51, %s2055_s30  ;;  %1796 = vrot.lane.b32.xlu1 %v1795_v54, %s2054_s5 }
 0x24a   :  { %1841 = vrot.lane.b32.xlu0 %v1820_v53, %s2055_s30  ;;  %1801 = vrot.lane.b32.xlu1 %v1820_v53, %s2054_s5 }
 0x24e   :  { %1851 = vrot.lane.b32.xlu0 %v1810_v51, %s2056_s13  ;;  %1806 = vrot.lane.b32.xlu1 %v1785_v52, %s2053_s4 }
 0x252   :  { %1861 = vrot.lane.b32.xlu0 %v1820_v53, %s2056_s13  ;;  %1816 = vrot.lane.b32.xlu1 %v1795_v54, %s2053_s4 }
 0x256   :  { %1871 = vrot.lane.b32.xlu0 %v1820_v53, %s2057_s14  ;;  %1826 = vrot.lane.b32.xlu1 %v1785_v52, %s2055_s30 }
 0x25a   :  { %1881 = vrot.lane.b32.xlu0 %v1795_v54, %s2057_s14  ;;  %1836 = vrot.lane.b32.xlu1 %v1795_v54, %s2055_s30 }
 0x25e   :  { %1891 = vrot.lane.b32.xlu0 %v1820_v53, %s2058_s2  ;;  %1846 = vrot.lane.b32.xlu1 %v1785_v52, %s2056_s13 }
 0x262   :  { %1901 = vrot.lane.b32.xlu0 %v1795_v54, %s2058_s2  ;;  %1856 = vrot.lane.b32.xlu1 %v1795_v54, %s2056_s13 }
 0x266   :  { %1911 = vrot.lane.b32.xlu0 %v1820_v53, %s2059_s24  ;;  %1866 = vrot.lane.b32.xlu1 %v1810_v51, %s2057_s14 }
 0x26a   :  { %1921 = vrot.lane.b32.xlu0 %v1795_v54, %s2059_s24  ;;  %1876 = vrot.lane.b32.xlu1 %v1785_v52, %s2057_s14 }
 0x26e   :  { %1931 = vrot.lane.b32.xlu0 %v1820_v53, %s2060_s15  ;;  %1886 = vrot.lane.b32.xlu1 %v1810_v51, %s2058_s2  ;;  %v506_v53 = vrot.slane %v498_v43, %v2306_v5 }
 0x272   :  { %1941 = vrot.lane.b32.xlu0 %v1795_v54, %s2060_s15  ;;  %1896 = vrot.lane.b32.xlu1 %v1785_v52, %s2058_s2  ;;  %v502_v54 = vrot.slane %v498_v43, %v2318_v12 }
 0x276   :  { %1906 = vrot.lane.b32.xlu1 %v1810_v51, %s2059_s24 }
 0x27a   :  { %1916 = vrot.lane.b32.xlu1 %v1785_v52, %s2059_s24 }
 0x27e   :  { %1926 = vrot.lane.b32.xlu1 %v1810_v51, %s2060_s15 }
 0x282   :  { %1936 = vrot.lane.b32.xlu1 %v1785_v52, %s2060_s15 }
 0x2b0   :  { %v2313_v8 = vpop.permute.xlu0 %1811  ;;  %v1787_v9 = vpop.permute.xlu1 %1786 }
 0x2b1   :  { %v1789_v19 = vunpack.i.h.bf16 %v1787_v9  ;;  %v1788_v20 = vunpack.i.l.bf16 %v1787_v9  ;;  %v1814_v60 = vunpack.i.h.bf16 %v2313_v8  ;;  %v1813_v17 = vunpack.i.l.bf16 %v2313_v8 }
 0x2b4   :  { %v2330_v14 = vpop.permute.xlu0 %1821  ;;  %v1792_v15 = vpop.permute.xlu1 %1791 }
 0x2b5   :  { %v1794_v21 = vunpack.i.h.bf16 %v1792_v15  ;;  %v1793_v22 = vunpack.i.l.bf16 %v1792_v15  ;;  %v1824_v9 = vunpack.i.h.bf16 %v2330_v14  ;;  %v1823_v11 = vunpack.i.l.bf16 %v2330_v14 }
 0x2b7   :  { %v368_v25 = vsel %vm363_vm14, %v1788_v20, %v1793_v22  ;;  %v369_v26 = vsel %vm363_vm14, %v1789_v19, %v1794_v21 }
 0x2b8   :  { %v1652_v27 = vpack.c.bf16 %v369_v26, %v368_v25  ;;  %v2358_v28 = vpop.permute.xlu0 %1831  ;;  %v1797_v29 = vpop.permute.xlu1 %1796 }
 0x2b9   :  { %v1799_v32 = vunpack.i.h.bf16 %v1797_v29  ;;  %v1798_v33 = vunpack.i.l.bf16 %v1797_v29 }
 0x2ba   :  { %1654 = vmatprep.subr.msk.bf16.mxu0 %vm1653_vm3, %v1652_v27  ;;  %vm426_vm3 = vcmp.lt.s32.totalorder %v2315_v10, 16 }
 0x2bb   :  { %v370_v36 = vsel %vm363_vm14, %v1798_v33, %v1788_v20  ;;  %v371_v37 = vsel %vm363_vm14, %v1799_v32, %v1789_v19  ;;  %v514_v20 = vrot.slane %v498_v43, %v2325_v13  ;;  %v429_v31 = vsel %vm426_vm3, %v1813_v17, %v1823_v11 }
 0x2bc   :  { %v1655_v39 = vpack.c.bf16 %v371_v37, %v370_v36  ;;  %v2384_v40 = vpop.permute.xlu0 %1841  ;;  %v1802_v41 = vpop.permute.xlu1 %1801 }
 0x2bd   :  { %v1804_v44 = vunpack.i.h.bf16 %v1802_v41  ;;  %v1803_v45 = vunpack.i.l.bf16 %v1802_v41  ;;  %vm2496_vm2 = vcmp.eq.s32.totalorder %v514_v20, 1 }
 0x2be   :  { %1657 = vmatpush1.bf16.msk.msra.mxu0 %vm1656_vm15, %v1655_v39  ;;  %vm556_vm15 = vmand %vm2396_vm6, %vm3460_vm7  ;;  %vm2455_vm6 = vcmp.eq.s32.totalorder %v455_v49, 1 }
 0x2bf   :  { %v364_v51 = vsel %vm363_vm14, %v1803_v45, %v1798_v33  ;;  %v365_v52 = vsel %vm363_vm14, %v1804_v44, %v1799_v32  ;;  %v366_v63 = vsel %vm363_vm14, %v1793_v22, %v1803_v45  ;;  %v367_v2 = vsel %vm363_vm14, %v1794_v21, %v1804_v44 }
 0x2c0   :  { %v1706_v3 = vpack.c.bf16 %v365_v52, %v364_v51  ;;  %v2427_v4 = vpop.permute.xlu0 %1851  ;;  %v1807_v6 = vpop.permute.xlu1 %1806  ;;  %v1709_v15 = vpack.c.bf16 %v367_v2, %v366_v63  ;;  %v510_v21 = vrot.slane %v498_v43, %v2338_v18  ;;  %vm2451_vm14 = vcmp.eq.s32.totalorder %v443_v48, 1 }
 0x2c1   :  { %v1809_v16 = vunpack.i.h.bf16 %v1807_v6  ;;  %v1808_v19 = vunpack.i.l.bf16 %v1807_v6  ;;  %v2460_v23 = vsel %vm556_vm15, 1, %v2052_v56  ;;  %v430_v32 = vsel %vm426_vm3, %v1814_v60, %v1824_v9  ;;  %vm2489_vm15 = vmand %vm2369_vm12, %vm3462_vm9 }
 0x2c2   :  { %1708 = vmatprep.subr.msk.bf16.mxu1 %vm1707_vm8, %v1706_v3  ;;  %vm2473_vm8 = vcmp.eq.s32.totalorder %v506_v53, 1  ;;  %vm1662_vm7 = vmpackc.low %vm2451_vm14, %vm2451_vm14  ;;  %vm2500_vm5 = vcmp.eq.s32.totalorder %v510_v21, 1  ;;  %v565_v41 = vrot.slane %v2460_v23, %v2306_v5  ;;  %v561_v44 = vrot.slane %v2460_v23, %v2318_v12 }
 0x2c3   :  { %v432_v14 = vsel %vm426_vm3, %v1809_v16, %v1814_v60  ;;  %1711 = vmatpush1.bf16.msk.msra.mxu1 %vm1710_vm10, %v1709_v15  ;;  %v431_v24 = vsel %vm426_vm3, %v1808_v19, %v1813_v17  ;;  %vm2477_vm10 = vcmp.eq.s32.totalorder %v502_v54, 1  ;;  %vm1713_vm9 = vmpackc.low %vm2455_vm6, %vm2455_vm6  ;;  %v573_v45 = vrot.slane %v2460_v23, %v2325_v13 }
 0x2c4   :  { %v2464_v25 = vpop.permute.xlu0 %1861  ;;  %v1817_v26 = vpop.permute.xlu1 %1816  ;;  %v1658_v33 = vpack.c.bf16 %v432_v14, %v431_v24  ;;  %v1715_v46 = vpack.c.bf16 %v430_v32, %v429_v31  ;;  %vm2532_vm4 = vmand %vm2489_vm15, %vm3463_vm11  ;;  %v698_v52 = vadd.s32 1, %v2286_v61  ;;  %v1844_v53 = vunpack.i.h.bf16 %v2384_v40 }
 0x2c5   :  { %v1819_v34 = vunpack.i.h.bf16 %v1817_v26  ;;  %v1818_v37 = vunpack.i.l.bf16 %v1817_v26  ;;  %v1843_v54 = vunpack.i.l.bf16 %v2384_v40  ;;  %v1834_v2 = vunpack.i.h.bf16 %v2358_v28  ;;  %vm2549_vm15 = vmand %vm2369_vm12, %vm3464_vm13 }
 0x2c6   :  { %1660 = vmatprep.subr.msk.bf16.mxu0 %vm1659_vm1, %v1658_v33  ;;  %v1833_v3 = vunpack.i.l.bf16 %v2358_v28  ;;  %vm1665_vm11 = vmpackc.low %vm2473_vm8, %vm2473_vm8  ;;  %vm2566_vm12 = vcmp.eq.s32.totalorder %v565_v41, 1  ;;  %vm2570_vm13 = vcmp.eq.s32.totalorder %v561_v44, 1  ;;  %v2577_v40 = vsel %vm2532_vm4, 1, %v2052_v56 }
 0x2c7   :  { %v428_v42 = vsel %vm426_vm3, %v1824_v9, %v1819_v34  ;;  %v434_v43 = vsel %vm426_vm3, %v1819_v34, %v1809_v16  ;;  %v427_v48 = vsel %vm426_vm3, %v1823_v11, %v1818_v37  ;;  %v433_v49 = vsel %vm426_vm3, %v1818_v37, %v1808_v19  ;;  %vm1716_vm3 = vmpackc.low %vm2469_vm0, %vm2469_vm0 }
 0x2c8   :  { %v2526_v47 = vpop.permute.xlu0 %1871  ;;  %v1827_v50 = vpop.permute.xlu1 %1826  ;;  %v1661_v60 = vpack.c.bf16 %v434_v43, %v433_v49  ;;  %v1712_v63 = vpack.c.bf16 %v428_v42, %v427_v48  ;;  %v569_v11 = vrot.slane %v2460_v23, %v2338_v18  ;;  %vm699_vm6 = vcmp.ge.s32.totalorder %v698_v52, 0  ;;  %vm1719_vm1 = vmpackc.low %vm2496_vm2, %vm2496_vm2 }
 0x2c9   :  { %v1829_v6 = vunpack.i.h.bf16 %v1827_v50  ;;  %v1828_v9 = vunpack.i.l.bf16 %v1827_v50  ;;  %vm700_vm4 = vcmp.lt.s32.totalorder %v698_v52, 16  ;;  %vm3508_vm0 = vcmp.lt.s32.totalorder %v2311_v7, 16  ;;  %vm1671_vm8 = vmpackc.low %vm2566_vm12, %vm2566_vm12 }
 0x2ca   :  { %1663 = vmatpush1.bf16.msk.msra.mxu0 %vm1662_vm7, %v1661_v60  ;;  %1714 = vmatprep.subr.msk.bf16.mxu1 %vm1713_vm9, %v1712_v63  ;;  %vm3505_vm7 = vcmp.lt.s32.totalorder %v2315_v10, 15  ;;  %vm2610_vm14 = vcmp.eq.s32.totalorder %v573_v45, 1  ;;  %v596_v26 = vrot.slane %v2577_v40, %v2306_v5  ;;  %v604_v27 = vrot.slane %v2577_v40, %v2325_v13 }
 0x2cb   :  { %v490_v15 = vsel %vm3505_vm7, %v1829_v6, %v1834_v2  ;;  %vm3506_vm9 = vmmov %vm3505_vm7  ;;  %1717 = vmatpush1.bf16.msk.msra.mxu1 %vm1716_vm3, %v1715_v46  ;;  %v487_v20 = vsel %vm3505_vm7, %v1833_v3, %v1843_v54  ;;  %v592_v33 = vrot.slane %v2577_v40, %v2318_v12  ;;  %v600_v34 = vrot.slane %v2577_v40, %v2338_v18 }
 0x2cc   :  { %v489_v16 = vsel %vm3506_vm9, %v1828_v9, %v1833_v3  ;;  %v2590_v17 = vpop.permute.xlu0 %1881  ;;  %v1837_v19 = vpop.permute.xlu1 %1836  ;;  %vm3507_vm9 = vmmov %vm3505_vm7  ;;  %v1864_v44 = vunpack.i.h.bf16 %v2464_v25  ;;  %v1863_v45 = vunpack.i.l.bf16 %v2464_v25  ;;  %v1854_v50 = vunpack.i.h.bf16 %v2427_v4 }
 0x2cd   :  { %v488_v21 = vsel %vm3507_vm9, %v1834_v2, %v1844_v53  ;;  %v1664_v14 = vpack.c.bf16 %v490_v15, %v489_v16  ;;  %v1839_v8 = vunpack.i.h.bf16 %v1837_v19  ;;  %vm2603_vm3 = vmand %vm2549_vm15, %vm3508_vm0  ;;  %v1838_v23 = vunpack.i.l.bf16 %v1837_v19 }
 0x2ce   :  { %vm3513_vm15 = vmmov %vm3505_vm7  ;;  %v1721_v37 = vpack.c.bf16 %v488_v21, %v487_v20  ;;  %v2647_v43 = vsel %vm2603_vm3, 1, %v2052_v56  ;;  %v1853_v51 = vunpack.i.l.bf16 %v2427_v4  ;;  %vm2706_vm3 = vcmp.eq.s32.totalorder %v592_v33, 1 }
 0x2cf   :  { %v486_v31 = vsel %vm3513_vm15, %v1844_v53, %v1839_v8  ;;  %v492_v32 = vsel %vm3505_vm7, %v1839_v8, %v1829_v6  ;;  %1666 = vmatprep.subr.msk.bf16.mxu0 %vm1665_vm11, %v1664_v14  ;;  %vm2633_vm9 = vmand %vm699_vm6, %vm700_vm4  ;;  %vm3518_vm6 = vcmp.ge.s32.totalorder %v2292_v1, 0  ;;  %v652_v30 = vrot.slane %v2647_v43, %v2306_v5 }
 0x2d0   :  { %vm3516_vm0 = vmmov %vm3505_vm7  ;;  %v1847_v42 = vpop.permute.xlu1 %1846  ;;  %v2651_v49 = vpop.permute.xlu0 %1891  ;;  %v648_v16 = vrot.slane %v2647_v43, %v2318_v12  ;;  %v660_v19 = vrot.slane %v2647_v43, %v2325_v13  ;;  %v656_v22 = vrot.slane %v2647_v43, %v2338_v18  ;;  %v1883_v33 = vunpack.i.l.bf16 %v2590_v17 }
 0x2d1   :  { %v485_v41 = vsel %vm3516_vm0, %v1843_v54, %v1838_v23  ;;  %vm3517_vm15 = vmmov %vm3516_vm0  ;;  %v1849_v52 = vunpack.i.h.bf16 %v1847_v42  ;;  %v1848_v53 = vunpack.i.l.bf16 %v1847_v42  ;;  %vm2752_vm0 = vcmp.eq.s32.totalorder %v652_v30, 1 }
 0x2d2   :  { %v491_v29 = vsel %vm3517_vm15, %v1838_v23, %v1828_v9  ;;  %vm1722_vm11 = vmpackc.low %vm2500_vm5, %vm2500_vm5  ;;  %v1718_v48 = vpack.c.bf16 %v486_v31, %v485_v41  ;;  %vm2680_vm15 = vcmp.eq.s32.totalorder %v596_v26, 1  ;;  %vm3533_vm5 = vcmp.lt.s32.totalorder %v2292_v1, 16 }
 0x2d3   :  { %v1667_v46 = vpack.c.bf16 %v492_v32, %v491_v29  ;;  %vm2662_vm4 = vmand %vm2633_vm9, %vm3518_vm6  ;;  %vm2684_vm6 = vcmp.eq.s32.totalorder %v569_v11, 1  ;;  %v1884_v32 = vunpack.i.h.bf16 %v2590_v17  ;;  %v1874_v29 = vunpack.i.h.bf16 %v2526_v47 }
 0x2d4   :  { %vm3521_vm7 = vmpackc.low %vm2477_vm10, %vm2477_vm10  ;;  %1720 = vmatprep.subr.msk.bf16.mxu1 %vm1719_vm1, %v1718_v48  ;;  %vm3526_vm10 = vcmp.lt.s32.totalorder %v2315_v10, 1  ;;  %v1857_v63 = vpop.permute.xlu1 %1856  ;;  %vm2722_vm1 = vcmp.eq.s32.totalorder %v600_v34, 1  ;;  %v2738_v20 = vpop.permute.xlu0 %1901  ;;  %v1873_v42 = vunpack.i.l.bf16 %v2526_v47  ;;  %vm2798_vm12 = vcmp.eq.s32.totalorder %v648_v16, 1 }
 0x2d5   :  { %1669 = vmatpush1.bf16.msk.msra.mxu0 %vm3521_vm7, %v1667_v46  ;;  %v549_v38 = vsel %vm3526_vm10, %v1849_v52, %v1854_v50  ;;  %vm3527_vm2 = vmmov %vm3526_vm10  ;;  %1723 = vmatpush1.bf16.msk.msra.mxu1 %vm1722_vm11, %v1721_v37  ;;  %vm2702_vm7 = vcmp.eq.s32.totalorder %v604_v27, 1  ;;  %v1859_v61 = vunpack.i.h.bf16 %v1857_v63  ;;  %v1858_v11 = vunpack.i.l.bf16 %v1857_v63 }
 0x2d6   :  { %v548_v60 = vsel %vm3527_vm2, %v1848_v53, %v1853_v51  ;;  %vm3532_vm10 = vmmov %vm3527_vm2  ;;  %v547_v39 = vsel %vm3527_vm2, %v1854_v50, %v1864_v44 }
 0x2d7   :  { %v546_v6 = vsel %vm3532_vm10, %v1853_v51, %v1863_v45  ;;  %v1670_v9 = vpack.c.bf16 %v549_v38, %v548_v60  ;;  %vm2718_vm11 = vmand %vm2662_vm4, %vm3533_vm5  ;;  %vm3538_vm10 = vcmp.ge.s32.totalorder %v2288_v62, 0  ;;  %vm3541_vm4 = vcmp.lt.s32.totalorder %v2315_v10, 1 }
 0x2d8   :  { %vm2734_vm2 = vmand %vm2633_vm9, %vm3538_vm10  ;;  %v545_v21 = vsel %vm3541_vm4, %v1864_v44, %v1859_v61  ;;  %v1727_v23 = vpack.c.bf16 %v547_v39, %v546_v6  ;;  %v544_v26 = vsel %vm3541_vm4, %v1863_v45, %v1858_v11  ;;  %v1867_v27 = vpop.permute.xlu1 %1866  ;;  %v2768_v31 = vsel %vm2718_vm11, 1, %v2052_v56  ;;  %v2835_v50 = vpop.permute.xlu0 %1911 }
 0x2d9   :  { %vm3542_vm5 = vmmov %vm3541_vm4  ;;  %1672 = vmatprep.subr.msk.bf16.mxu0 %vm1671_vm8, %v1670_v9  ;;  %v1724_v37 = vpack.c.bf16 %v545_v21, %v544_v26  ;;  %vm3546_vm8 = vcmp.lt.s32.totalorder %v2288_v62, 16  ;;  %v1869_v43 = vunpack.i.h.bf16 %v1867_v27  ;;  %v1868_v44 = vunpack.i.l.bf16 %v1867_v27 }
 0x2da   :  { %v551_v14 = vsel %vm3542_vm5, %v1859_v61, %v1849_v52  ;;  %vm1677_vm10 = vmpackc.low %vm2680_vm15, %vm2680_vm15  ;;  %vm2802_vm11 = vcmp.eq.s32.totalorder %v660_v19, 1  ;;  %v712_v45 = vrot.slane %v2768_v31, %v2306_v5  ;;  %v708_v4 = vrot.slane %v2768_v31, %v2318_v12 }
 0x2db   :  { %vm3545_vm5 = vmmov %vm3541_vm4  ;;  %v720_v54 = vrot.slane %v2768_v31, %v2325_v13  ;;  %v716_v38 = vrot.slane %v2768_v31, %v2338_v18  ;;  %v1894_v39 = vunpack.i.h.bf16 %v2651_v49  ;;  %v1893_v9 = vunpack.i.l.bf16 %v2651_v49 }
 0x2dc   :  { %v550_v28 = vsel %vm3545_vm5, %v1858_v11, %v1848_v53  ;;  %vm2776_vm4 = vmand %vm2734_vm2, %vm3546_vm8  ;;  %v1877_v24 = vpop.permute.xlu1 %1876  ;;  %v1903_v11 = vunpack.i.l.bf16 %v2738_v20  ;;  %v2912_v49 = vpop.permute.xlu0 %1921  ;;  %v1914_v41 = vunpack.i.h.bf16 %v2835_v50 }
 0x2dd   :  { %v1673_v34 = vpack.c.bf16 %v551_v14, %v550_v28  ;;  %vm3549_vm5 = vmpackc.low %vm2570_vm13, %vm2570_vm13  ;;  %vm3555_vm13 = vcmp.lt.s32.totalorder %v2315_v10, 127  ;;  %v2829_v46 = vsel %vm2776_vm4, 1, %v2052_v56  ;;  %v1879_v52 = vunpack.i.h.bf16 %v1877_v24 }
 0x2de   :  { %vm3550_vm2 = vmpackc.low %vm2610_vm14, %vm2610_vm14  ;;  %v637_v35 = vsel %vm3555_vm13, %v1869_v43, %v1874_v29  ;;  %v1878_v53 = vunpack.i.l.bf16 %v1877_v24  ;;  %v768_v60 = vrot.slane %v2829_v46, %v2306_v5  ;;  %v772_v27 = vrot.slane %v2829_v46, %v2338_v18 }
 0x2df   :  { %1675 = vmatpush1.bf16.msk.msra.mxu0 %vm3549_vm5, %v1673_v34  ;;  %1726 = vmatprep.subr.msk.bf16.mxu1 %vm3550_vm2, %v1724_v37  ;;  %vm1680_vm8 = vmpackc.low %vm2706_vm3, %vm2706_vm3 }
 0x2e0   :  { %vm3556_vm5 = vmmov %vm3555_vm13  ;;  %1678 = vmatprep.subr.msk.bf16.mxu0 %vm1677_vm10, %v2273_v55  ;;  %v1887_v36 = vpop.permute.xlu1 %1886 }
 0x2e1   :  { %v636_v17 = vsel %vm3556_vm5, %v1868_v44, %v1873_v42  ;;  %vm3557_vm14 = vmpackc.low %vm2684_vm6, %vm2684_vm6  ;;  %v1889_v15 = vunpack.i.h.bf16 %v1887_v36  ;;  %v1888_v16 = vunpack.i.l.bf16 %v1887_v36 }
 0x2e2   :  { %1729 = vmatpush1.bf16.msk.msra.mxu1 %vm3557_vm14, %v1727_v23  ;;  %vm1734_vm2 = vmpackc.low %vm2722_vm1, %vm2722_vm1  ;;  %v1682_v51 = vpack.c.bf16 %v637_v35, %v636_v17  ;;  %vm3565_vm14 = vcmp.ge.s32.totalorder %v2311_v7, 0  ;;  %v776_v23 = vrot.slane %v2829_v46, %v2325_v13  ;;  %v2975_v17 = vpop.permute.xlu0 %1931 }
 0x2e3   :  { %vm3558_vm15 = vmmov %vm3556_vm5  ;;  %1681 = vmatpush1.bf16.msk.msra.mxu0 %vm1680_vm8, %v2277_v58  ;;  %vm2892_vm8 = vcmp.eq.s32.totalorder %v712_v45, 1 }
 0x2e4   :  { %v634_v55 = vsel %vm3558_vm15, %v1873_v42, %v1883_v33  ;;  %vm3559_vm10 = vmmov %vm3556_vm5  ;;  %vm2849_vm5 = vcmp.eq.s32.totalorder %v656_v22, 1  ;;  %v1897_v8 = vpop.permute.xlu1 %1896  ;;  %v764_v22 = vrot.slane %v2829_v46, %v2318_v12 }
 0x2e5   :  { %v635_v48 = vsel %vm3559_vm10, %v1874_v29, %v1884_v32  ;;  %vm3560_vm6 = vmpackc.low %vm2702_vm7, %vm2702_vm7  ;;  %v1899_v28 = vunpack.i.h.bf16 %v1897_v8  ;;  %v1898_v34 = vunpack.i.l.bf16 %v1897_v8  ;;  %v1913_v29 = vunpack.i.l.bf16 %v2835_v50 }
 0x2e6   :  { %1732 = vmatprep.subr.msk.bf16.mxu1 %vm3560_vm6, %v2275_v57  ;;  %vm1683_vm4 = vmpackc.low %vm2752_vm0, %vm2752_vm0  ;;  %v1739_v2 = vpack.c.bf16 %v635_v48, %v634_v55  ;;  %vm689_vm6 = vcmp.lt.s32.totalorder %v2315_v10, 113 }
 0x2e7   :  { %vm1686_vm13 = vmpackc.low %vm2798_vm12, %vm2798_vm12  ;;  %1684 = vmatprep.subr.msk.bf16.mxu0 %vm1683_vm4, %v1682_v51  ;;  %1735 = vmatpush1.bf16.msk.msra.mxu1 %vm1734_vm2, %v2279_v59  ;;  %v1904_v59 = vunpack.i.h.bf16 %v2738_v20  ;;  %vm2919_vm4 = vcmp.eq.s32.totalorder %v708_v4, 1  ;;  %v693_v21 = vsel %vm689_vm6, %v1889_v15, %v1894_v39  ;;  %v692_v14 = vsel %vm689_vm6, %v1888_v16, %v1893_v9 }
 0x2e8   :  { %vm3563_vm7 = vmmov %vm3559_vm10  ;;  %v1688_v26 = vpack.c.bf16 %v693_v21, %v692_v14  ;;  %v694_v62 = vsel %vm689_vm6, %v1898_v34, %v1888_v16  ;;  %v696_v47 = vsel %vm689_vm6, %v1903_v11, %v1898_v34  ;;  %v1907_v35 = vpop.permute.xlu1 %1906 }
 0x2e9   :  { %v641_v57 = vsel %vm3563_vm7, %v1884_v32, %v1879_v52  ;;  %vm3564_vm0 = vmmov %vm3563_vm7  ;;  %vm2927_vm7 = vcmp.eq.s32.totalorder %v716_v38, 1  ;;  %v690_v32 = vsel %vm689_vm6, %v1893_v9, %v1903_v11  ;;  %v697_v42 = vsel %vm689_vm6, %v1904_v59, %v1899_v28 }
 0x2ea   :  { %v639_v30 = vsel %vm3564_vm0, %v1879_v52, %v1869_v43  ;;  %vm2875_vm15 = vmand %vm2633_vm9, %vm3565_vm14  ;;  %v1924_v43 = vunpack.i.h.bf16 %v2912_v49  ;;  %v1742_v45 = vpack.c.bf16 %v697_v42, %v696_v47  ;;  %v1909_v46 = vunpack.i.h.bf16 %v1907_v35  ;;  %v845_v42 = vld [vmem:[%s3451_s6] sm:$0xff] }
 0x2eb   :  { %vm3568_vm10 = vmmov %vm3564_vm0  ;;  %v1908_v55 = vunpack.i.l.bf16 %v1907_v35  ;;  %v1933_v11 = vunpack.i.l.bf16 %v2975_v17 }
 0x2ec   :  { %v638_v3 = vsel %vm3568_vm10, %v1878_v53, %v1868_v44  ;;  %vm3569_vm3 = vmmov %vm3564_vm0  ;;  %v1923_v44 = vunpack.i.l.bf16 %v2912_v49  ;;  %vm749_vm10 = vcmp.lt.s32.totalorder %v2315_v10, 112  ;;  %v1917_v25 = vpop.permute.xlu1 %1916 }
 0x2ed   :  { %v640_v58 = vsel %vm3569_vm3, %v1883_v33, %v1878_v53  ;;  %vm1737_vm9 = vmpackc.low %vm2802_vm11, %vm2802_vm11  ;;  %v1685_v61 = vpack.c.bf16 %v639_v30, %v638_v3  ;;  %vm3572_vm11 = vcmp.lt.s32.totalorder %v2311_v7, 16  ;;  %v691_v33 = vsel %vm689_vm6, %v1894_v39, %v1904_v59 }
 0x2ee   :  { %v1736_v40 = vpack.c.bf16 %v641_v57, %v640_v58  ;;  %vm1740_vm1 = vmpackc.low %vm2849_vm5, %vm2849_vm5  ;;  %vm2923_vm5 = vcmp.eq.s32.totalorder %v720_v54, 1  ;;  %v1745_v48 = vpack.c.bf16 %v691_v33, %v690_v32  ;;  %v753_v50 = vsel %vm749_vm10, %v1909_v46, %v1914_v41  ;;  %v1942_v58 = vpop.permute.xlu0 %1941 }
 0x2ef   :  { %vm2907_vm2 = vmand %vm2875_vm15, %vm3572_vm11  ;;  %1687 = vmatpush1.bf16.msk.msra.mxu0 %vm1686_vm13, %v1685_v61  ;;  %vm2953_vm13 = vcmp.eq.s32.totalorder %v768_v60, 1  ;;  %v752_v51 = vsel %vm749_vm10, %v1908_v55, %v1913_v29  ;;  %v750_v30 = vsel %vm749_vm10, %v1913_v29, %v1923_v44  ;;  %v751_v38 = vsel %vm749_vm10, %v1914_v41, %v1924_v43 }
 0x2f0   :  { %1738 = vmatprep.subr.msk.bf16.mxu1 %vm1737_vm9, %v1736_v40  ;;  %vm1689_vm12 = vmpackc.low %vm2892_vm8, %vm2892_vm8  ;;  %v2947_v31 = vsel %vm2907_vm2, 1, %v2052_v56  ;;  %v695_v56 = vsel %vm689_vm6, %v1899_v28, %v1889_v15  ;;  %vm2993_vm9 = vcmp.eq.s32.totalorder %v764_v22, 1  ;;  %v1694_v53 = vpack.c.bf16 %v753_v50, %v752_v51  ;;  %v1927_v61 = vpop.permute.xlu1 %1926 }
 0x2f1   :  { %1741 = vmatpush1.bf16.msk.msra.mxu1 %vm1740_vm1, %v1739_v2  ;;  %1690 = vmatprep.subr.msk.bf16.mxu0 %vm1689_vm12, %v1688_v26  ;;  %vm1692_vm0 = vmpackc.low %vm2919_vm4, %vm2919_vm4  ;;  %v1691_v24 = vpack.c.bf16 %v695_v56, %v694_v62  ;;  %vm2997_vm8 = vcmp.eq.s32.totalorder %v776_v23, 1  ;;  %vm3001_vm1 = vcmp.eq.s32.totalorder %v772_v27, 1  ;;  %v824_v57 = vrot.slane %v2947_v31, %v2306_v5  ;;  %v847_v56 = vld [vmem:[%s3451_s6 + $0x10] sm:$0xff]  ;;  %v1011_v26 = vld [vmem:[%s3452_s7 + $0x8] sm:$0xff] }
 0x2f2   :  { %vm1743_vm14 = vmpackc.low %vm2923_vm5, %vm2923_vm5  ;;  %v1919_v60 = vunpack.i.h.bf16 %v1917_v25  ;;  %v1918_v63 = vunpack.i.l.bf16 %v1917_v25  ;;  %v820_v2 = vrot.slane %v2947_v31, %v2318_v12  ;;  %v832_v3 = vrot.slane %v2947_v31, %v2325_v13 }
 0x2f3   :  { %vm1746_vm15 = vmpackc.low %vm2927_vm7, %vm2927_vm7  ;;  %1693 = vmatpush1.bf16.msk.msra.mxu0 %vm1692_vm0, %v1691_v24  ;;  %1744 = vmatprep.subr.msk.bf16.mxu1 %vm1743_vm14, %v1742_v45  ;;  %v828_v5 = vrot.slane %v2947_v31, %v2338_v18  ;;  %v1751_v12 = vpack.c.bf16 %v751_v38, %v750_v30  ;;  %vm3034_vm4 = vcmp.eq.s32.totalorder %v824_v57, 1  ;;  %v1934_v59 = vunpack.i.h.bf16 %v2975_v17 }
 0x2f4   :  { %vm1695_vm3 = vmpackc.low %vm2953_vm13, %vm2953_vm13  ;;  %v757_v36 = vsel %vm749_vm10, %v1924_v43, %v1919_v60  ;;  %v754_v6 = vsel %vm749_vm10, %v1918_v63, %v1908_v55  ;;  %v755_v39 = vsel %vm749_vm10, %v1919_v60, %v1909_v46  ;;  %v756_v9 = vsel %vm749_vm10, %v1923_v44, %v1918_v63  ;;  %v1937_v14 = vpop.permute.xlu1 %1936 }
 0x2f5   :  { %1747 = vmatpush1.bf16.msk.msra.mxu1 %vm1746_vm15, %v1745_v48  ;;  %1696 = vmatprep.subr.msk.bf16.mxu0 %vm1695_vm3, %v1694_v53  ;;  %vm1698_vm11 = vmpackc.low %vm2993_vm9, %vm2993_vm9  ;;  %v1697_v13 = vpack.c.bf16 %v755_v39, %v754_v6  ;;  %v1748_v18 = vpack.c.bf16 %v757_v36, %v756_v9  ;;  %v1929_v15 = vunpack.i.h.bf16 %v1927_v61  ;;  %v1928_v16 = vunpack.i.l.bf16 %v1927_v61 }
 0x2f6   :  { %vm1749_vm2 = vmpackc.low %vm2997_vm8, %vm2997_vm8  ;;  %vm805_vm5 = vcmp.lt.s32.totalorder %v2315_v10, 111  ;;  %v1944_v19 = vunpack.i.h.bf16 %v1942_v58  ;;  %v1943_v49 = vunpack.i.l.bf16 %v1942_v58  ;;  %vm3053_vm12 = vcmp.eq.s32.totalorder %v820_v2, 1  ;;  %v848_v10 = vld [vmem:[%s3451_s6 + $0x18] sm:$0xff]  ;;  %s2061_s6 = smov [#allocation7]  }
 0x2f7   :  { %vm1752_vm6 = vmpackc.low %vm3001_vm1, %vm3001_vm1  ;;  %1699 = vmatpush1.bf16.msk.msra.mxu0 %vm1698_vm11, %v1697_v13  ;;  %1750 = vmatprep.subr.msk.bf16.mxu1 %vm1749_vm2, %v1748_v18  ;;  %v809_v1 = vsel %vm805_vm5, %v1929_v15, %v1934_v59  ;;  %v808_v7 = vsel %vm805_vm5, %v1928_v16, %v1933_v11  ;;  %vm3057_vm13 = vcmp.eq.s32.totalorder %v832_v3, 1  ;;  %v1939_v22 = vunpack.i.h.bf16 %v1937_v14  ;;  %s1535_s25 = sshll.u32 %s2061_s6, 4  ;;  %s1536_s25 = int_to_ptr.vmem [resolvable:$true] %s1535_s25 }
 0x2f8   :  { %vm1701_vm7 = vmpackc.low %vm3034_vm4, %vm3034_vm4  ;;  %v1700_v21 = vpack.c.bf16 %v809_v1, %v808_v7  ;;  %v1938_v23 = vunpack.i.l.bf16 %v1937_v14  ;;  %vm3061_vm0 = vcmp.eq.s32.totalorder %v828_v5, 1  ;;  %v806_v28 = vsel %vm805_vm5, %v1933_v11, %v1943_v49  ;;  %p2026_p3 = scmp.lt.s32.totalorder %s1536_s25, %s1536_s25 }
 0x2f9   :  { %1753 = vmatpush1.bf16.msk.msra.mxu1 %vm1752_vm6, %v1751_v12  ;;  %v807_v27 = vsel %vm805_vm5, %v1934_v59, %v1944_v19  ;;  %vm1704_vm14 = vmpackc.low %vm3053_vm12, %vm3053_vm12  ;;  %v813_v31 = vsel %vm805_vm5, %v1944_v19, %v1939_v22  ;;  %v811_v33 = vsel %vm805_vm5, %v1939_v22, %v1929_v15  ;;  %vm3597_vm3 = vcmask 130048  }
 0x2fa   :  { %1702 = vmatprep.subr.msk.bf16.mxu0 %vm1701_vm7, %v1700_v21  ;;  %v810_v32 = vsel %vm805_vm5, %v1938_v23, %v1928_v16  ;;  %v812_v34 = vsel %vm805_vm5, %v1943_v49, %v1938_v23  ;;  %vm1755_vm15 = vmpackc.low %vm3057_vm13, %vm3057_vm13  ;;  %v1757_v29 = vpack.c.bf16 %v807_v27, %v806_v28  ;;  %v1010_v27 = vld [vmem:[%s3452_s7] sm:$0xff]  ;;  %s2021_s7 = scalar_lea.vmem %s1536_s25, 2048 }
 0x2fb   :  { %v1703_v37 = vpack.c.bf16 %v811_v33, %v810_v32  ;;  %v1754_v41 = vpack.c.bf16 %v813_v31, %v812_v34  ;;  %vm1758_vm10 = vmpackc.low %vm3061_vm0, %vm3061_vm0  ;;  %v1012_v34 = vld [vmem:[%s3453_s8] sm:$0xff]  ;;  %p2022_p2 = scmp.ne.s32.totalorder %s1536_s25, %s2021_s7  ;;  %p2027_p4 = scmp.lt.s32.totalorder %s2021_s7, %s2021_s7 }
 0x2fc   :  { %vm3598_vm9 = vmmov %vm3597_vm3 }
 0x2fd   :  { %1705 = vmatpush1.bf16.msk.msra.mxu0 %vm1704_vm14, %v1703_v37  ;;  %1756 = vmatprep.subr.msk.bf16.mxu1 %vm1755_vm15, %v1754_v41  ;;  %v1013_v37 = vld [vmem:[%s3453_s8 + $0x8] sm:$0xff]  ;;  %vm3599_vm8 = vmmov %vm3597_vm3  ;;  %p2028_p5 = por %p2027_p4, %p2026_p3 }
 0x2fe   :  { %1759 = vmatpush1.bf16.msk.msra.mxu1 %vm1758_vm10, %v1757_v29  ;;  %vm3600_vm1 = vmmov %vm3597_vm3 }
 0x2ff   :  { %vm3601_vm11 = vmmov %vm3600_vm1  ;;  %p2029_p6 = pnand %p2028_p5, %p2022_p2 }
 0x300   :  { %921 = vmatmul.mubr.f32.vlgmr.msra.gmra.mrb[4].mxu0 %v845_v42  ;;  %vm3602_vm2 = vmmov %vm3600_vm1 }
 0x301   :  { %998 = vmatmul.mubr.f32.vlgmr.msra.gmra.mrb[4].mxu1 %v845_v42  ;;  %1589 = vmatprep.mubr.msk.f32.mxu0 %vm3597_vm3, %v848_v10  ;;  %vm3603_vm6 = vmmov %vm3600_vm1 }
 0x302   :  { %1627 = vmatprep.mubr.msk.f32.mxu1 %vm3598_vm9, %v848_v10  ;;  %vm3604_vm4 = vmmov %vm3600_vm1 }
 0x303   :  { %vm3605_vm5 = vmmov %vm3600_vm1 }
 0x304   :  { %927 = vmatmul.mubr.f32.gmra.mrb[6].mxu0 %v847_v56  ;;  %vm3606_vm7 = vmmov %vm3600_vm1 }
 0x305   :  { %1004 = vmatmul.mubr.f32.gmra.mrb[6].mxu1 %v847_v56  ;;  %1188 = vmatprep.mubr.f32.mxu0 %v2051_v0 }
 0x306   :  { %1277 = vmatprep.mubr.f32.mxu1 %v2051_v0 }
 0x3d3   :  { %v3099_v43 = vpop.f32.mrb[4].mxu0 }
 0x3d4   :  { %v1024_v44 = vmul.f32 %v3099_v43, %v3099_v43  ;;  %v3103_v62 = vpop.f32.mrb[5].mxu0  ;;  %v3105_v47 = vpop.f32.mrb[4].mxu1 }
 0x3d5   :  { %v1014_v35 = vadd.f32 %v3103_v62, %v3099_v43  ;;  %v1025_v17 = vmul.f32 %v3103_v62, %v3103_v62  ;;  %v3111_v24 = vpop.f32.mrb[5].mxu1  ;;  %v1026_v45 = vmul.f32 %v3105_v47, %v3105_v47 }
 0x3d6   :  { %v1027_v30 = vmul.f32 %v3111_v24, %v3111_v24 }
 0x3d7   :  { %v3115_v46 = vpop.f32.mrb[6].mxu0  ;;  %v1015_v55 = vadd.f32 %v1014_v35, %v3105_v47  ;;  %v1032_v48 = vadd.f32 %v1025_v17, %v1024_v44 }
 0x3d8   :  { %v1028_v50 = vmul.f32 %v3115_v46, %v3115_v46  ;;  %v3120_v51 = vpop.f32.mrb[7].mxu0  ;;  %v3122_v52 = vpop.f32.mrb[6].mxu1 }
 0x3d9   :  { %v1019_v53 = vadd.f32 %v3120_v51, %v3115_v46  ;;  %v1029_v25 = vmul.f32 %v3120_v51, %v3120_v51  ;;  %v1030_v4 = vmul.f32 %v3122_v52, %v3122_v52  ;;  %v3130_v54 = vpop.f32.mrb[7].mxu1  ;;  %v1016_v57 = vadd.f32 %v1015_v55, %v3111_v24 }
 0x3da   :  { %v1033_v38 = vadd.f32 %v1032_v48, %v1026_v45  ;;  %v1031_v5 = vmul.f32 %v3130_v54, %v3130_v54 }
 0x3db   :  { %1017 = vadd.xlane.f32.xlu1 %v1016_v57  ;;  %v1020_v60 = vadd.f32 %v1019_v53, %v3122_v52  ;;  %v1037_v63 = vadd.f32 %v1029_v25, %v1028_v50 }
 0x3dc   :  { %v1034_v2 = vadd.f32 %v1033_v38, %v1027_v30 }
 0x3dd   :  { %v1021_v3 = vadd.f32 %v1020_v60, %v3130_v54  ;;  %v1038_v58 = vadd.f32 %v1037_v63, %v1030_v4 }
 0x3df   :  { %1022 = vadd.xlane.f32.xlu0 %v1021_v3  ;;  %v1039_v36 = vadd.f32 %v1038_v58, %v1031_v5 }
 0x3e1   :  { %1040 = vadd.xlane.f32.xlu1 %v1039_v36  ;;  %v1108_v36 = vld [vmem:[%s3454_s9] sm:$0xff] }
 0x3e3   :  { %1035 = vadd.xlane.f32.xlu0 %v1034_v2 }
 0x468   :  { %v1018_v6 = vpop.xlane.xlu1 %1017 }
 0x469   :  { %v1042_v39 = vmul.f32 0.001953125, %v1018_v6  ;;  %v1109_v6 = vld [vmem:[%s3454_s9 + $0x8] sm:$0xff] }
 0x46b   :  { %v1056_v9 = vsub.f32 %v3099_v43, %v1042_v39  ;;  %v1057_v12 = vsub.f32 %v3103_v62, %v1042_v39  ;;  %v1058_v13 = vsub.f32 %v3105_v47, %v1042_v39  ;;  %v1059_v61 = vsub.f32 %v3111_v24, %v1042_v39 }
 0x46c   :  { %v1023_v18 = vpop.xlane.xlu0 %1022  ;;  %v1046_v21 = vmul.f32 %v1042_v39, %v1042_v39  ;;  %v1110_v39 = vld [vmem:[%s3454_s9 + $0x10] sm:$0xff] }
 0x46d   :  { %v1043_v40 = vmul.f32 0.001953125, %v1023_v18 }
 0x46e   :  { %v1041_v59 = vpop.xlane.xlu1 %1040 }
 0x46f   :  { %v1045_v11 = vmul.f32 0.001953125, %v1041_v59  ;;  %v1047_v15 = vmul.f32 %v1043_v40, %v1043_v40  ;;  %v1060_v16 = vsub.f32 %v3115_v46, %v1043_v40  ;;  %v1061_v19 = vsub.f32 %v3120_v51, %v1043_v40 }
 0x470   :  { %v1036_v49 = vpop.xlane.xlu0 %1035  ;;  %v1062_v1 = vsub.f32 %v3122_v52, %v1043_v40  ;;  %v1063_v7 = vsub.f32 %v3130_v54, %v1043_v40 }
 0x471   :  { %v1049_v20 = vsub.f32 %v1045_v11, %v1047_v15  ;;  %v1044_v14 = vmul.f32 0.001953125, %v1036_v49 }
 0x473   :  { %v1051_v8 = vadd.f32 1e-05, %v1049_v20  ;;  %v1048_v22 = vsub.f32 %v1044_v14, %v1046_v21 }
 0x475   :  { %1949 = vrsqrt.f32 %v1051_v8  ;;  %v1050_v23 = vadd.f32 1e-05, %v1048_v22 }
 0x477   :  { %1951 = vrsqrt.f32 %v1050_v23 }
 0x47f   :  { %v1950_v28 = vpop.eup %1949 }
 0x480   :  { %v1055_v31 = vmul.f32 %v1950_v28, %v1011_v26 }
 0x481   :  { %v1952_v32 = vpop.eup %1951 }
 0x482   :  { %1071 = vperm.xlu1 %1784, %v1055_v31   ;;  %v1054_v33 = vmul.f32 %v1952_v32, %v1010_v27 }
 0x484   :  { %1066 = vperm.xlu0 %1783, %v1054_v33  }
 0x486   :  { %1084 = vperm.xlu1 %1784, %v1012_v34  }
 0x488   :  { %1089 = vperm.xlu0 %1783, %v1013_v37  }
 0x501   :  { %v1072_v41 = vpop.permute.xlu1 %1071 }
 0x502   :  { %v1078_v62 = vmul.f32 %v1072_v41, %v1060_v16  ;;  %v1079_v47 = vmul.f32 %v1072_v41, %v1061_v19  ;;  %v1080_v24 = vmul.f32 %v1072_v41, %v1062_v1  ;;  %v1081_v45 = vmul.f32 %v1072_v41, %v1063_v7 }
 0x503   :  { %v1067_v29 = vpop.permute.xlu0 %1066 }
 0x504   :  { %v1074_v42 = vmul.f32 %v1067_v29, %v1056_v9  ;;  %v1075_v10 = vmul.f32 %v1067_v29, %v1057_v12  ;;  %v1076_v56 = vmul.f32 %v1067_v29, %v1058_v13  ;;  %v1077_v43 = vmul.f32 %v1067_v29, %v1059_v61  ;;  %v1111_v9 = vld [vmem:[%s3454_s9 + $0x18] sm:$0xff] }
 0x505   :  { %v1085_v44 = vpop.permute.xlu1 %1084 }
 0x506   :  { %v1092_v35 = vadd.f32 %v1085_v44, %v1074_v42  ;;  %v1093_v17 = vadd.f32 %v1085_v44, %v1075_v10  ;;  %v1094_v46 = vadd.f32 %v1085_v44, %v1076_v56  ;;  %v1095_v55 = vadd.f32 %v1085_v44, %v1077_v43 }
 0x507   :  { %v1090_v48 = vpop.permute.xlu0 %1089 }
 0x508   :  { %v1096_v50 = vadd.f32 %v1090_v48, %v1078_v62  ;;  %v1097_v51 = vadd.f32 %v1090_v48, %v1079_v47  ;;  %v1098_v52 = vadd.f32 %v1090_v48, %v1080_v24  ;;  %v1099_v53 = vadd.f32 %v1090_v48, %v1081_v45 }
 0x509   :  { %v1100_v25 = vmax.f32 %v1092_v35, 0.0  ;;  %v1101_v54 = vmax.f32 %v1093_v17, 0.0  ;;  %v1102_v30 = vmax.f32 %v1094_v46, 0.0  ;;  %v1103_v60 = vmax.f32 %v1095_v55, 0.0 }
 0x50a   :  { %v1104_v4 = vmax.f32 %v1096_v50, 0.0  ;;  %v1105_v57 = vmax.f32 %v1097_v51, 0.0  ;;  %v1106_v38 = vmax.f32 %v1098_v52, 0.0  ;;  %v1107_v63 = vmax.f32 %v1099_v53, 0.0 }
 0x50c   :  { %v1760_v2 = vpack.c.bf16 %v1105_v57, %v1101_v54  ;;  %v1762_v3 = vpack.c.bf16 %v1104_v4, %v1100_v25  ;;  %v1764_v5 = vpack.c.bf16 %v1107_v63, %v1103_v60  ;;  %v1766_v58 = vpack.c.bf16 %v1106_v38, %v1102_v30 }
 0x50e   :  { %1761 = vmatprep.subr.bf16.mxu0 %v1760_v2  ;;  %1765 = vmatprep.subr.bf16.mxu1 %v1764_v5  ;;  %v1306_v2 = vld [vmem:[%s3456_s11] sm:$0xff] }
 0x50f   :  { %1763 = vmatpush1.bf16.msra.mxu0 %v1762_v3  ;;  %1767 = vmatpush1.bf16.msra.mxu1 %v1766_v58  ;;  %v1307_v3 = vld [vmem:[%s3456_s11 + $0x8] sm:$0xff] }
 0x512   :  { %1628 = vmatmul.mubr.msk.f32.vlgmr.msra.gmra.mrb[8].mxu0 %vm3599_vm8, %v1108_v36  ;;  %1632 = vmatmul.mubr.msk.f32.vlgmr.msra.gmra.mrb[8].mxu1 %vm3600_vm1, %v1108_v36 }
 0x513   :  { %1194 = vmatprep.mubr.f32.mxu0 %v2051_v0  ;;  %1283 = vmatprep.mubr.f32.mxu1 %v2051_v0 }
 0x516   :  { %1629 = vmatmul.mubr.msk.f32.gmra.mrb[10].mxu0 %vm3601_vm11, %v1109_v6  ;;  %1633 = vmatmul.mubr.msk.f32.gmra.mrb[10].mxu1 %vm3602_vm2, %v1109_v6 }
 0x517   :  { %1200 = vmatprep.mubr.f32.mxu0 %v2051_v0  ;;  %1289 = vmatprep.mubr.f32.mxu1 %v2051_v0 }
 0x51a   :  { %1630 = vmatmul.mubr.msk.f32.gmra.mrb[12].mxu0 %vm3603_vm6, %v1110_v39  ;;  %1634 = vmatmul.mubr.msk.f32.gmra.mrb[12].mxu1 %vm3604_vm4, %v1110_v39 }
 0x51b   :  { %1206 = vmatprep.mubr.f32.mxu0 %v2051_v0  ;;  %1295 = vmatprep.mubr.f32.mxu1 %v2051_v0 }
 0x51e   :  { %1631 = vmatmul.mubr.msk.f32.gmra.mrb[14].mxu0 %vm3605_vm5, %v1111_v9  ;;  %1635 = vmatmul.mubr.msk.f32.gmra.mrb[14].mxu1 %vm3606_vm7, %v1111_v9 }
 0x5e5   :  { %v3185_v12 = vpop.f32.mrb[8].mxu0  ;;  %v3191_v61 = vpop.f32.mrb[8].mxu1 }
 0x5e6   :  { %v1330_v13 = vmul.f32 %v3185_v12, %v3185_v12  ;;  %v3189_v18 = vpop.f32.mrb[9].mxu0  ;;  %v3197_v0 = vpop.f32.mrb[9].mxu1  ;;  %v1332_v11 = vmul.f32 %v3191_v61, %v3191_v61 }
 0x5e7   :  { %v1310_v40 = vadd.f32 %v3189_v18, %v3185_v12  ;;  %v1331_v59 = vmul.f32 %v3189_v18, %v3189_v18  ;;  %v1333_v23 = vmul.f32 %v3197_v0, %v3197_v0 }
 0x5e9   :  { %v3201_v15 = vpop.f32.mrb[10].mxu0  ;;  %v1311_v16 = vadd.f32 %v1310_v40, %v3191_v61  ;;  %v1346_v19 = vadd.f32 %v1331_v59, %v1330_v13  ;;  %v3208_v7 = vpop.f32.mrb[10].mxu1 }
 0x5ea   :  { %v1334_v49 = vmul.f32 %v3201_v15, %v3201_v15  ;;  %v3206_v1 = vpop.f32.mrb[11].mxu0  ;;  %v3215_v8 = vpop.f32.mrb[11].mxu1  ;;  %v1336_v22 = vmul.f32 %v3208_v7, %v3208_v7 }
 0x5eb   :  { %v1315_v20 = vadd.f32 %v3206_v1, %v3201_v15  ;;  %v1335_v21 = vmul.f32 %v3206_v1, %v3206_v1  ;;  %v1312_v14 = vadd.f32 %v1311_v16, %v3197_v0  ;;  %v1347_v26 = vadd.f32 %v1346_v19, %v1332_v11 }
 0x5ec   :  { %v1337_v43 = vmul.f32 %v3215_v8, %v3215_v8 }
 0x5ed   :  { %1313 = vadd.xlane.f32.xlu1 %v1312_v14  ;;  %v3221_v28 = vpop.f32.mrb[12].mxu0  ;;  %v1316_v27 = vadd.f32 %v1315_v20, %v3208_v7  ;;  %v1351_v31 = vadd.f32 %v1335_v21, %v1334_v49  ;;  %v1348_v32 = vadd.f32 %v1347_v26, %v1333_v23  ;;  %v3228_v37 = vpop.f32.mrb[12].mxu1 }
 0x5ee   :  { %v1338_v33 = vmul.f32 %v3221_v28, %v3221_v28  ;;  %v3226_v34 = vpop.f32.mrb[13].mxu0  ;;  %v3234_v42 = vpop.f32.mrb[13].mxu1  ;;  %v1340_v56 = vmul.f32 %v3228_v37, %v3228_v37 }
 0x5ef   :  { %v1320_v41 = vadd.f32 %v3226_v34, %v3221_v28  ;;  %v1339_v29 = vmul.f32 %v3226_v34, %v3226_v34  ;;  %v1317_v10 = vadd.f32 %v1316_v27, %v3215_v8  ;;  %1349 = vadd.xlane.f32.xlu0 %v1348_v32  ;;  %v1352_v44 = vadd.f32 %v1351_v31, %v1336_v22 }
 0x5f0   :  { %v1341_v53 = vmul.f32 %v3234_v42, %v3234_v42 }
 0x5f1   :  { %v3241_v62 = vpop.f32.mrb[14].mxu0  ;;  %v1321_v47 = vadd.f32 %v1320_v41, %v3228_v37  ;;  %v1356_v35 = vadd.f32 %v1339_v29, %v1338_v33  ;;  %v3248_v45 = vpop.f32.mrb[14].mxu1  ;;  %v1353_v46 = vadd.f32 %v1352_v44, %v1337_v43 }
 0x5f2   :  { %v1342_v17 = vmul.f32 %v3241_v62, %v3241_v62  ;;  %v3246_v24 = vpop.f32.mrb[15].mxu0  ;;  %v1344_v50 = vmul.f32 %v3248_v45, %v3248_v45  ;;  %v3256_v51 = vpop.f32.mrb[15].mxu1 }
 0x5f3   :  { %v1325_v55 = vadd.f32 %v3246_v24, %v3241_v62  ;;  %v1343_v48 = vmul.f32 %v3246_v24, %v3246_v24  ;;  %v1322_v52 = vadd.f32 %v1321_v47, %v3234_v42  ;;  %1318 = vadd.xlane.f32.xlu0 %v1317_v10  ;;  %1354 = vadd.xlane.f32.xlu1 %v1353_v46 }
 0x5f4   :  { %v1357_v25 = vadd.f32 %v1356_v35, %v1340_v56  ;;  %v1345_v30 = vmul.f32 %v3256_v51, %v3256_v51 }
 0x5f5   :  { %v1361_v4 = vadd.f32 %v1343_v48, %v1342_v17  ;;  %v1326_v54 = vadd.f32 %v1325_v55, %v3248_v45 }
 0x5f6   :  { %v1358_v57 = vadd.f32 %v1357_v25, %v1341_v53 }
 0x5f7   :  { %v1327_v38 = vadd.f32 %v1326_v54, %v3256_v51  ;;  %v1362_v60 = vadd.f32 %v1361_v4, %v1344_v50  ;;  %1323 = vadd.xlane.f32.xlu0 %v1322_v52 }
 0x5f9   :  { %1328 = vadd.xlane.f32.xlu1 %v1327_v38  ;;  %v1363_v63 = vadd.f32 %v1362_v60, %v1345_v30 }
 0x5fb   :  { %1359 = vadd.xlane.f32.xlu0 %v1358_v57  ;;  %v1302_v57 = vld [vmem:[%s3455_s10] sm:$0xff] }
 0x5fd   :  { %1364 = vadd.xlane.f32.xlu1 %v1363_v63 }
 0x60e   :  { %1448 = vperm.xlu1 %1784, %v1306_v2  }
 0x611   :  { %1453 = vperm.xlu0 %1783, %v1307_v3   ;;  %v1303_v3 = vld [vmem:[%s3455_s10 + $0x8] sm:$0xff] }
 0x67a   :  { %v1314_v5 = vpop.xlane.xlu1 %1313 }
 0x67b   :  { %v3271_v58 = vmul.f32 0.001953125, %v1314_v5 }
 0x67c   :  { %v1350_v36 = vpop.xlane.xlu0 %1349 }
 0x67d   :  { %v1374_v6 = vmul.f32 %v3271_v58, %v3271_v58  ;;  %v1394_v39 = vsub.f32 %v3185_v12, %v3271_v58  ;;  %v1395_v9 = vsub.f32 %v3189_v18, %v3271_v58  ;;  %v1396_v13 = vsub.f32 %v3191_v61, %v3271_v58  ;;  %v1961_v12 = vld [vmem:[%s3445_s0] sm:$0xff]  ;;  %v1962_v18 = vld [vmem:[%s3445_s0 + $0x8] sm:$0xff] }
 0x67e   :  { %v1370_v40 = vmul.f32 0.001953125, %v1350_v36  ;;  %v1397_v59 = vsub.f32 %v3197_v0, %v3271_v58  ;;  %v1963_v0 = vld [vmem:[%s3445_s0 + $0x10] sm:$0xff] }
 0x680   :  { %v1378_v11 = vsub.f32 %v1370_v40, %v1374_v6  ;;  %v1319_v16 = vpop.xlane.xlu0 %1318  ;;  %v1355_v19 = vpop.xlane.xlu1 %1354  ;;  %v1304_v6 = vld [vmem:[%s3455_s10 + $0x10] sm:$0xff]  ;;  %v1305_v40 = vld [vmem:[%s3455_s10 + $0x18] sm:$0xff] }
 0x681   :  { %v3283_v20 = vmul.f32 0.001953125, %v1319_v16  ;;  %v1371_v21 = vmul.f32 0.001953125, %v1355_v19 }
 0x682   :  { %v1382_v49 = vadd.f32 1e-05, %v1378_v11 }
 0x683   :  { %v1375_v14 = vmul.f32 %v3283_v20, %v3283_v20  ;;  %v1398_v22 = vsub.f32 %v3201_v15, %v3283_v20  ;;  %v1399_v23 = vsub.f32 %v3206_v1, %v3283_v20  ;;  %v1400_v27 = vsub.f32 %v3208_v7, %v3283_v20  ;;  %v1965_v1 = vld [vmem:[%s3445_s0 + $0x20] sm:$0xff]  ;;  %v1966_v7 = vld [vmem:[%s3445_s0 + $0x28] sm:$0xff] }
 0x684   :  { %1953 = vrsqrt.f32 %v1382_v49  ;;  %v1324_v26 = vpop.xlane.xlu0 %1323  ;;  %v1401_v31 = vsub.f32 %v3215_v8, %v3283_v20  ;;  %v1967_v8 = vld [vmem:[%s3445_s0 + $0x30] sm:$0xff] }
 0x685   :  { %v1379_v32 = vsub.f32 %v1371_v21, %v1375_v14  ;;  %v3295_v33 = vmul.f32 0.001953125, %v1324_v26  ;;  %v1308_v21 = vld [vmem:[%s3456_s11 + $0x10] sm:$0xff]  ;;  %v1309_v14 = vld [vmem:[%s3456_s11 + $0x18] sm:$0xff] }
 0x686   :  { %v1329_v41 = vpop.xlane.xlu1 %1328 }
 0x687   :  { %v3297_v29 = vmul.f32 0.001953125, %v1329_v41  ;;  %v1383_v10 = vadd.f32 1e-05, %v1379_v32  ;;  %v1402_v56 = vsub.f32 %v3221_v28, %v3295_v33  ;;  %v1403_v43 = vsub.f32 %v3226_v34, %v3295_v33 }
 0x688   :  { %v1376_v44 = vmul.f32 %v3295_v33, %v3295_v33  ;;  %v1360_v47 = vpop.xlane.xlu0 %1359  ;;  %v1404_v35 = vsub.f32 %v3228_v37, %v3295_v33  ;;  %v1405_v17 = vsub.f32 %v3234_v42, %v3295_v33 }
 0x689   :  { %v1406_v46 = vsub.f32 %v3241_v62, %v3297_v29  ;;  %1955 = vrsqrt.f32 %v1383_v10  ;;  %v1372_v55 = vmul.f32 0.001953125, %v1360_v47  ;;  %v1407_v50 = vsub.f32 %v3246_v24, %v3297_v29  ;;  %v1969_v24 = vld [vmem:[%s3445_s0 + $0x40] sm:$0xff] }
 0x68a   :  { %v1365_v48 = vpop.xlane.xlu1 %1364  ;;  %v1408_v52 = vsub.f32 %v3248_v45, %v3297_v29  ;;  %v1377_v53 = vmul.f32 %v3297_v29, %v3297_v29  ;;  %v1409_v4 = vsub.f32 %v3256_v51, %v3297_v29  ;;  %v1970_v45 = vld [vmem:[%s3445_s0 + $0x48] sm:$0xff]  ;;  %v1971_v29 = vld [vmem:[%s3445_s0 + $0x50] sm:$0xff] }
 0x68b   :  { %v1373_v25 = vmul.f32 0.001953125, %v1365_v48  ;;  %v1380_v54 = vsub.f32 %v1372_v55, %v1376_v44 }
 0x68d   :  { %v1381_v30 = vsub.f32 %v1373_v25, %v1377_v53  ;;  %v1384_v60 = vadd.f32 1e-05, %v1380_v54 }
 0x68e   :  { %v1954_v38 = vpop.eup %1953  ;;  %v1449_v55 = vpop.permute.xlu1 %1448 }
 0x68f   :  { %v1385_v63 = vadd.f32 1e-05, %v1381_v30  ;;  %v1390_v2 = vmul.f32 %v1954_v38, %v1302_v57  ;;  %1957 = vrsqrt.f32 %v1384_v60 }
 0x690   :  { %v1454_v26 = vpop.permute.xlu0 %1453 }
 0x691   :  { %1959 = vrsqrt.f32 %v1385_v63  ;;  %1412 = vperm.xlu0 %1783, %v1390_v2  }
 0x693   :  { %v1956_v5 = vpop.eup %1955 }
 0x694   :  { %v1391_v36 = vmul.f32 %v1956_v5, %v1303_v3 }
 0x696   :  { %1417 = vperm.xlu1 %1784, %v1391_v36  }
 0x699   :  { %v1958_v11 = vpop.eup %1957 }
 0x69a   :  { %v1392_v19 = vmul.f32 %v1958_v11, %v1304_v6 }
 0x69b   :  { %v1960_v16 = vpop.eup %1959 }
 0x69c   :  { %v1393_v49 = vmul.f32 %v1960_v16, %v1305_v40  ;;  %1422 = vperm.xlu1 %1784, %v1392_v19  }
 0x69e   :  { %1427 = vperm.xlu0 %1783, %v1393_v49  }
 0x6a0   :  { %1458 = vperm.xlu1 %1784, %v1308_v21  }
 0x6a2   :  { %1463 = vperm.xlu0 %1783, %v1309_v14  }
 0x710   :  { %v1413_v32 = vpop.permute.xlu0 %1412 }
 0x711   :  { %v1430_v41 = vmul.f32 %v1413_v32, %v1394_v39  ;;  %v1431_v10 = vmul.f32 %v1413_v32, %v1395_v9  ;;  %v1432_v44 = vmul.f32 %v1413_v32, %v1396_v13  ;;  %v1433_v47 = vmul.f32 %v1413_v32, %v1397_v59  ;;  %v1964_v9 = vld [vmem:[%s3445_s0 + $0x18] sm:$0xff] }
 0x713   :  { %v1466_v48 = vadd.f32 %v1449_v55, %v1430_v41  ;;  %v1467_v53 = vadd.f32 %v1449_v55, %v1431_v10  ;;  %v1468_v25 = vadd.f32 %v1449_v55, %v1432_v44  ;;  %v1469_v54 = vadd.f32 %v1449_v55, %v1433_v47 }
 0x715   :  { %v1482_v39 = vadd.f32 %v1961_v12, %v1466_v48  ;;  %v1483_v61 = vadd.f32 %v1962_v18, %v1467_v53  ;;  %v1484_v58 = vadd.f32 %v1963_v0, %v1468_v25  ;;  %v1485_v13 = vadd.f32 %v1964_v9, %v1469_v54  ;;  %v1418_v59 = vpop.permute.xlu1 %1417  ;;  %v1973_v53 = vld [vmem:[%s3445_s0 + $0x60] sm:$0xff]  ;;  %v1974_v54 = vld [vmem:[%s3445_s0 + $0x68] sm:$0xff] }
 0x716   :  { %v1434_v63 = vmul.f32 %v1418_v59, %v1398_v22  ;;  %v1435_v2 = vmul.f32 %v1418_v59, %v1399_v23  ;;  %v1436_v3 = vmul.f32 %v1418_v59, %v1400_v27  ;;  %v1437_v5 = vmul.f32 %v1418_v59, %v1401_v31  ;;  %v1968_v31 = vld [vmem:[%s3445_s0 + $0x38] sm:$0xff] }
 0x717   :  { %v1498_v57 = vmax.f32 %v1482_v39, 0.0  ;;  %v1499_v30 = vmax.f32 %v1483_v61, 0.0  ;;  %v1500_v38 = vmax.f32 %v1484_v58, 0.0  ;;  %v1501_v60 = vmax.f32 %v1485_v13, 0.0  ;;  %v1975_v39 = vld [vmem:[%s3445_s0 + $0x70] sm:$0xff]  ;;  %v1976_v61 = vld [vmem:[%s3445_s0 + $0x78] sm:$0xff] }
 0x718   :  { %v1470_v36 = vadd.f32 %v1454_v26, %v1434_v63  ;;  %v1471_v6 = vadd.f32 %v1454_v26, %v1435_v2  ;;  %v1472_v15 = vadd.f32 %v1454_v26, %v1436_v3  ;;  %v1473_v22 = vadd.f32 %v1454_v26, %v1437_v5 }
 0x719   :  { %1514 = vst [vmem:[#allocation7] sm:$0xff] %v1498_v57  ;;  %1515 = vst [vmem:[#allocation7 + $0x8] sm:$0xff] %v1499_v30 }
 0x71a   :  { %1516 = vst [vmem:[#allocation7 + $0x10] sm:$0xff] %v1500_v38  ;;  %1517 = vst [vmem:[#allocation7 + $0x18] sm:$0xff] %v1501_v60  ;;  %v1486_v23 = vadd.f32 %v1965_v1, %v1470_v36  ;;  %v1487_v27 = vadd.f32 %v1966_v7, %v1471_v6  ;;  %v1488_v20 = vadd.f32 %v1967_v8, %v1472_v15 }
 0x71b   :  { %v1489_v40 = vadd.f32 %v1968_v31, %v1473_v22  ;;  %v1423_v11 = vpop.permute.xlu1 %1422 }
 0x71c   :  { %v1502_v19 = vmax.f32 %v1486_v23, 0.0  ;;  %v1503_v49 = vmax.f32 %v1487_v27, 0.0  ;;  %v1504_v21 = vmax.f32 %v1488_v20, 0.0  ;;  %v1438_v26 = vmul.f32 %v1423_v11, %v1402_v56 }
 0x71d   :  { %v1428_v16 = vpop.permute.xlu0 %1427  ;;  %v1505_v14 = vmax.f32 %v1489_v40, 0.0  ;;  %v1439_v32 = vmul.f32 %v1423_v11, %v1403_v43  ;;  %v1440_v41 = vmul.f32 %v1423_v11, %v1404_v35  ;;  %v1441_v10 = vmul.f32 %v1423_v11, %v1405_v17 }
 0x71e   :  { %1518 = vst [vmem:[#allocation7 + $0x20] sm:$0xff] %v1502_v19  ;;  %1519 = vst [vmem:[#allocation7 + $0x28] sm:$0xff] %v1503_v49  ;;  %v1442_v28 = vmul.f32 %v1428_v16, %v1406_v46  ;;  %v1443_v34 = vmul.f32 %v1428_v16, %v1407_v50  ;;  %v1444_v37 = vmul.f32 %v1428_v16, %v1408_v52 }
 0x71f   :  { %1520 = vst [vmem:[#allocation7 + $0x30] sm:$0xff] %v1504_v21  ;;  %1521 = vst [vmem:[#allocation7 + $0x38] sm:$0xff] %v1505_v14  ;;  %v1459_v44 = vpop.permute.xlu1 %1458  ;;  %v1445_v42 = vmul.f32 %v1428_v16, %v1409_v4  ;;  %v1972_v4 = vld [vmem:[%s3445_s0 + $0x58] sm:$0xff] }
 0x720   :  { %v1474_v33 = vadd.f32 %v1459_v44, %v1438_v26  ;;  %v1475_v56 = vadd.f32 %v1459_v44, %v1439_v32  ;;  %v1476_v43 = vadd.f32 %v1459_v44, %v1440_v41  ;;  %v1477_v35 = vadd.f32 %v1459_v44, %v1441_v10 }
 0x721   :  { %v1464_v17 = vpop.permute.xlu0 %1463 }
 0x722   :  { %v1478_v47 = vadd.f32 %v1464_v17, %v1442_v28  ;;  %v1479_v62 = vadd.f32 %v1464_v17, %v1443_v34  ;;  %v1480_v46 = vadd.f32 %v1464_v17, %v1444_v37  ;;  %v1481_v55 = vadd.f32 %v1464_v17, %v1445_v42 }
 0x723   :  { %v1490_v50 = vadd.f32 %v1969_v24, %v1474_v33  ;;  %v1491_v51 = vadd.f32 %v1970_v45, %v1475_v56  ;;  %v1492_v52 = vadd.f32 %v1971_v29, %v1476_v43  ;;  %v1493_v48 = vadd.f32 %v1972_v4, %v1477_v35 }
 0x724   :  { %v1494_v25 = vadd.f32 %v1973_v53, %v1478_v47  ;;  %v1495_v12 = vadd.f32 %v1974_v54, %v1479_v62  ;;  %v1496_v18 = vadd.f32 %v1975_v39, %v1480_v46  ;;  %v1497_v0 = vadd.f32 %v1976_v61, %v1481_v55 }
 0x725   :  { %v1506_v58 = vmax.f32 %v1490_v50, 0.0  ;;  %v1507_v9 = vmax.f32 %v1491_v51, 0.0  ;;  %v1508_v13 = vmax.f32 %v1492_v52, 0.0  ;;  %v1509_v59 = vmax.f32 %v1493_v48, 0.0 }
 0x726   :  { %v1510_v57 = vmax.f32 %v1494_v25, 0.0  ;;  %v1511_v30 = vmax.f32 %v1495_v12, 0.0  ;;  %v1512_v38 = vmax.f32 %v1496_v18, 0.0  ;;  %v1513_v60 = vmax.f32 %v1497_v0, 0.0 }
 0x727   :  { %1522 = vst [vmem:[#allocation7 + $0x40] sm:$0xff] %v1506_v58  ;;  %1523 = vst [vmem:[#allocation7 + $0x48] sm:$0xff] %v1507_v9 }
 0x728   :  { %1524 = vst [vmem:[#allocation7 + $0x50] sm:$0xff] %v1508_v13  ;;  %1525 = vst [vmem:[#allocation7 + $0x58] sm:$0xff] %v1509_v59 }
 0x729   :  { %1526 = vst [vmem:[#allocation7 + $0x60] sm:$0xff] %v1510_v57  ;;  %1527 = vst [vmem:[#allocation7 + $0x68] sm:$0xff] %v1511_v30 }
 0x72a   :  { %1528 = vst [vmem:[#allocation7 + $0x70] sm:$0xff] %v1512_v38  ;;  %1529 = vst [vmem:[#allocation7 + $0x78] sm:$0xff] %v1513_v60 }
 0x72b   :  { %2032 = shalt.err (!%p2029_p6)
}
 0x72c   :  { %s2033_s4 = scalar_lea.hbm %s3457_s12, 2048 }
 0x72d   :  { %p2034_p7 = scmp.ne.s32.totalorder %s3457_s12, %s2033_s4  ;;  %p2037_p8 = scmp.lt.u32.totalorder %s2033_s4, %s3457_s12 }
 0x72f   :  { %p2039_p9 = pnand %p2037_p8, %p2034_p7 }
 0x731   :  { %2042 = shalt.err (!%p2039_p9)
}
 0x732   :  { %s2062_s2 = smov 512   ;;  %s2063_s9 = smov 32  }
 0x733   :  { %1541 = dma.vmem_to_hbm [thread:$0]  %s1536_s25, 2048, %s3457_s12, [#allocation4], %s2062_s2, %s2062_s2, %s2063_s9  }
 0x734   :  { %2047 = dma.done.wait [#allocation4], 2048  }
 0x735   :  { %2048 = vsyncadd [#allocation4], 4294965248 }
 0x736   :  { %1545 = vsyncpa [#allocation3], 1 }
 0x737   :  { %1546 = vsyncpa [#allocation6], 1 }
 0x738   :  { %1547 = vsyncpa [#allocation4], 1 }

</bundles_post_ra>
